<compile_context>
chip_gen: v7x
topology: tpu7x:2x2x1
jax: 0.10.0
libtpu: 0.0.40
codegen_flags: <defaults>
</compile_context>

<pallas_src>
import math

import numpy as np

import jax
import jax.numpy as jnp
from jax.experimental import pallas as pl
from jax.experimental.pallas import tpu as pltpu

VMEM = pltpu.MemorySpace.VMEM


# ---------------------------------------------------------------------------
# Fused forward kernel (single pallas_call, everything in VMEM, MXU-only math)
# ---------------------------------------------------------------------------
def _net_kernel(x_ref, m1_ref, s1_ref, rp1_ref, cp1_ref, b1_ref,
                m2_ref, s2_ref, rp2_ref, cp2_ref, b2_ref,
                wg_ref, g_ref, bfc1_ref, wfc2_ref, bfc2_ref,
                out_ref):
    f32 = jnp.float32

    def dot(a, b):
        return jnp.dot(a, b, preferred_element_type=f32)

    x = x_ref[...]                                            # (N*28, 28)

    # ---------------- conv1 (1->10, 5x5) + maxpool2 + relu ----------------
    # For each kernel row ki:  (row-shift select) @ x  @ (banded width/weight mat)
    # c1[n*24+h, co*24+w] = conv1[n, co, h, w]
    c1 = dot(dot(s1_ref[0], x), m1_ref[0])
    for ki in range(1, 5):
        c1 = c1 + dot(dot(s1_ref[ki], x), m1_ref[ki])         # (N*24, 240)
    # 2x2 max-pool: even/odd row + even/odd column 0/1 selector matmuls.
    hp1 = jnp.maximum(dot(rp1_ref[0], c1), dot(rp1_ref[1], c1))   # (N*12, 240)
    p1 = jnp.maximum(dot(hp1, cp1_ref[0]), dot(hp1, cp1_ref[1]))  # (N*12, 120)
    a1 = jnp.maximum(p1 + b1_ref[...], 0.0)                   # bias + ReLU

    # ---------------- conv2 (10->20, 5x5) + maxpool2 + relu ----------------
    # (Dropout after conv2 is identity in eval mode.)
    c2 = dot(dot(s2_ref[0], a1), m2_ref[0])
    for ki in range(1, 5):
        c2 = c2 + dot(dot(s2_ref[ki], a1), m2_ref[ki])        # (N*8, 160)
    hp2 = jnp.maximum(dot(rp2_ref[0], c2), dot(rp2_ref[1], c2))   # (N*4, 160)
    p2 = jnp.maximum(dot(hp2, cp2_ref[0]), dot(hp2, cp2_ref[1]))  # (N*4, 80)
    a2 = jnp.maximum(p2 + b2_ref[...], 0.0)                   # (N*4, 80)

    # ------- fc head: Linear(320,50) -> ReLU -> Linear(50,10) -> Softmax ------
    # NCHW view(-1,320) flatten is folded into the per-row fc1 weight groups.
    # (Dropout before fc2 is identity in eval mode.)
    h1 = dot(dot(g_ref[0], a2), wg_ref[0])
    for hh in range(1, 4):
        h1 = h1 + dot(dot(g_ref[hh], a2), wg_ref[hh])         # (N, 50)
    h1 = jnp.maximum(h1 + bfc1_ref[...], 0.0)

    logits = dot(h1, wfc2_ref[...]) + bfc2_ref[...]           # (N, 10)
    m = jnp.max(logits, axis=1, keepdims=True)
    e = jnp.exp(logits - m)
    out_ref[...] = e / jnp.sum(e, axis=1, keepdims=True)


# ---------------------------------------------------------------------------
# One-time weight / selector re-layout (host-side, weights only, free at setup)
# ---------------------------------------------------------------------------
def prepare_params(params, n_batch):
    n = n_batch
    w1 = np.asarray(params["w_conv1"], np.float32)    # (10, 1, 5, 5)
    b1 = np.asarray(params["b_conv1"], np.float32)    # (10,)
    w2 = np.asarray(params["w_conv2"], np.float32)    # (20, 10, 5, 5)
    b2 = np.asarray(params["b_conv2"], np.float32)    # (20,)
    wfc1 = np.asarray(params["w_fc1"], np.float32)    # (320, 50)

    C1, C2 = 10, 20

    # conv1 banded width matrices per kernel row ki: (28, C1*24)
    #   m1[ki, w+kj, co*24+w] = w1[co, 0, ki, kj]
    m1 = np.zeros((5, 28, C1 * 24), np.float32)
    for ki in range(5):
        for co in range(C1):
            for w in range(24):
                for kj in range(5):
                    m1[ki, w + kj, co * 24 + w] = w1[co, 0, ki, kj]

    # conv1 row-shift selectors: (N*24, N*28), one-hot per output row
    s1 = np.zeros((5, n * 24, n * 28), np.float32)
    for ki in range(5):
        for b in range(n):
            for h in range(24):
                s1[ki, b * 24 + h, b * 28 + ki + h] = 1.0

    # 2x2 pool selectors for conv1 (rows then columns)
    rp1 = np.zeros((2, n * 12, n * 24), np.float32)
    for k in range(n * 12):
        rp1[0, k, 2 * k] = 1.0
        rp1[1, k, 2 * k + 1] = 1.0
    cp1 = np.zeros((2, C1 * 24, C1 * 12), np.float32)
    for co in range(C1):
        for w in range(12):
            cp1[0, co * 24 + 2 * w, co * 12 + w] = 1.0
            cp1[1, co * 24 + 2 * w + 1, co * 12 + w] = 1.0
    b1p = np.zeros((1, C1 * 12), np.float32)
    for co in range(C1):
        b1p[0, co * 12:(co + 1) * 12] = b1[co]

    # conv2 banded matrices per ki: (C1*12, C2*8)
    #   m2[ki, ci*12 + w + kj, co*8 + w] = w2[co, ci, ki, kj]
    m2 = np.zeros((5, C1 * 12, C2 * 8), np.float32)
    for ki in range(5):
        for co in range(C2):
            for ci in range(C1):
                for w in range(8):
                    for kj in range(5):
                        m2[ki, ci * 12 + w + kj, co * 8 + w] = w2[co, ci, ki, kj]

    s2 = np.zeros((5, n * 8, n * 12), np.float32)
    for ki in range(5):
        for b in range(n):
            for h in range(8):
                s2[ki, b * 8 + h, b * 12 + ki + h] = 1.0

    rp2 = np.zeros((2, n * 4, n * 8), np.float32)
    for k in range(n * 4):
        rp2[0, k, 2 * k] = 1.0
        rp2[1, k, 2 * k + 1] = 1.0
    cp2 = np.zeros((2, C2 * 8, C2 * 4), np.float32)
    for co in range(C2):
        for w in range(4):
            cp2[0, co * 8 + 2 * w, co * 4 + w] = 1.0
            cp2[1, co * 8 + 2 * w + 1, co * 4 + w] = 1.0
    b2p = np.zeros((1, C2 * 4), np.float32)
    for co in range(C2):
        b2p[0, co * 4:(co + 1) * 4] = b2[co]

    # fc1 weights regrouped per pooled row h' (this realizes the PyTorch NCHW
    # view(-1, 320) flatten order c*16 + h*4 + w with zero runtime transpose):
    #   wg[h', c*4+w, :] = wfc1[c*16 + h'*4 + w, :]
    wg = np.transpose(wfc1.reshape(C2, 4, 4, 50), (1, 0, 2, 3)).reshape(4, C2 * 4, 50)

    # fc1 per-row batch gather selectors: (4, N, N*4), g[h', b, b*4+h'] = 1
    g = np.zeros((4, n, n * 4), np.float32)
    for hh in range(4):
        for b in range(n):
            g[hh, b, b * 4 + hh] = 1.0

    return {
        "m1": jnp.asarray(m1), "s1": jnp.asarray(s1),
        "rp1": jnp.asarray(rp1), "cp1": jnp.asarray(cp1), "b1p": jnp.asarray(b1p),
        "m2": jnp.asarray(m2), "s2": jnp.asarray(s2),
        "rp2": jnp.asarray(rp2), "cp2": jnp.asarray(cp2), "b2p": jnp.asarray(b2p),
        "wg": jnp.asarray(wg), "g": jnp.asarray(g),
        "bfc1": jnp.asarray(params["b_fc1"], jnp.float32).reshape(1, 50),
        "wfc2": jnp.asarray(params["w_fc2"], jnp.float32),              # (50, 10)
        "bfc2": jnp.asarray(params["b_fc2"], jnp.float32).reshape(1, 10),
    }


def net_forward(prep, x):
    """Whole forward pass as ONE fused Pallas kernel (no grid, all VMEM)."""
    n = x.shape[0]
    x2 = x.reshape(n * 28, 28)   # contiguous (free) reshape of the network input
    args = (x2, prep["m1"], prep["s1"], prep["rp1"], prep["cp1"], prep["b1p"],
            prep["m2"], prep["s2"], prep["rp2"], prep["cp2"], prep["b2p"],
            prep["wg"], prep["g"], prep["bfc1"], prep["wfc2"], prep["bfc2"])
    return pl.pallas_call(
        _net_kernel,
        out_shape=jax.ShapeDtypeStruct((n, 10), jnp.float32),
        in_specs=[pl.BlockSpec(memory_space=VMEM)] * len(args),
        out_specs=pl.BlockSpec(memory_space=VMEM),
    )(*args)


# ---------------------------------------------------------------------------
# Parameter init (PyTorch-style uniform) and pure-JAX reference
# ---------------------------------------------------------------------------
def init_params(key):
    def unif(k, shape, fan_in):
        bound = 1.0 / math.sqrt(fan_in)
        return jax.random.uniform(k, shape, jnp.float32, -bound, bound)

    ks = jax.random.split(key, 8)
    return {
        "w_conv1": unif(ks[0], (10, 1, 5, 5), 1 * 5 * 5),
        "b_conv1": unif(ks[1], (10,), 1 * 5 * 5),
        "w_conv2": unif(ks[2], (20, 10, 5, 5), 10 * 5 * 5),
        "b_conv2": unif(ks[3], (20,), 10 * 5 * 5),
        "w_fc1":   unif(ks[4], (320, 50), 320),
        "b_fc1":   unif(ks[5], (50,), 320),
        "w_fc2":   unif(ks[6], (50, 10), 50),
        "b_fc2":   unif(ks[7], (10,), 50),
    }


def net_reference(params, x):
    """Pure-JAX (XLA) reference of the PyTorch module, eval mode."""
    def conv(y, w, b):
        y = jax.lax.conv_general_dilated(
            y, w, window_strides=(1, 1), padding="VALID",
            dimension_numbers=("NCHW", "OIHW", "NCHW"))
        return y + b[None, :, None, None]

    def maxpool2(y):
        n, c, h, w = y.shape
        return y.reshape(n, c, h // 2, 2, w // 2, 2).max(axis=(3, 5))

    y = jnp.maximum(maxpool2(conv(x, params["w_conv1"], params["b_conv1"])), 0.0)
    y = jnp.maximum(maxpool2(conv(y, params["w_conv2"], params["b_conv2"])), 0.0)
    y = y.reshape(y.shape[0], -1)                 # NCHW flatten -> (N, 320)
    h = jnp.maximum(y @ params["w_fc1"] + params["b_fc1"], 0.0)
    logits = h @ params["w_fc2"] + params["b_fc2"]
    return jax.nn.softmax(logits, axis=1)


if __name__ == "__main__":
    key = jax.random.PRNGKey(0)
    k_params, k_x = jax.random.split(key)
    params = init_params(k_params)
    prep = prepare_params(params, n_batch=2)          # one-time weight re-layout
    # MNIST-shaped input (batch=2): the view(-1, 320) forces 28x28 spatial.
    x = jax.random.normal(k_x, (2, 1, 28, 28), jnp.float32)

    out = jax.block_until_ready(jax.jit(net_forward)(prep, x))

    assert out.shape == (2, 10)
    assert bool(jnp.all(jnp.isfinite(out)))
    # softmax rows must sum to 1
    assert bool(jnp.all(jnp.abs(jnp.sum(out, axis=1) - 1.0) < 1e-4))

    # correctness vs. a pure-JAX reference (high-precision matmuls)
    with jax.default_matmul_precision("highest"):
        ref = net_reference(params, x)
    assert bool(jnp.allclose(out, ref, atol=1e-2, rtol=1e-2)), (
        "kernel output does not match the JAX reference")

    print("KERNEL_OK")
</pallas_src>

<mosaic_0001>
module attributes {stable_mosaic.version = 11 : i64} {
  func.func @_net_kernel(%arg0: memref<56x28xf32, #tpu.memory_space<vmem>>, %arg1: memref<5x28x240xf32, #tpu.memory_space<vmem>>, %arg2: memref<5x48x56xf32, #tpu.memory_space<vmem>>, %arg3: memref<2x24x48xf32, #tpu.memory_space<vmem>>, %arg4: memref<2x240x120xf32, #tpu.memory_space<vmem>>, %arg5: memref<1x120xf32, #tpu.memory_space<vmem>>, %arg6: memref<5x120x160xf32, #tpu.memory_space<vmem>>, %arg7: memref<5x16x24xf32, #tpu.memory_space<vmem>>, %arg8: memref<2x8x16xf32, #tpu.memory_space<vmem>>, %arg9: memref<2x160x80xf32, #tpu.memory_space<vmem>>, %arg10: memref<1x80xf32, #tpu.memory_space<vmem>>, %arg11: memref<4x80x50xf32, #tpu.memory_space<vmem>>, %arg12: memref<4x2x8xf32, #tpu.memory_space<vmem>>, %arg13: memref<1x50xf32, #tpu.memory_space<vmem>>, %arg14: memref<50x10xf32, #tpu.memory_space<vmem>>, %arg15: memref<1x10xf32, #tpu.memory_space<vmem>>, %arg16: memref<2x10xf32, #tpu.memory_space<vmem>>) attributes {dimension_semantics = [], scalar_prefetch = 0 : i64, scratch_operands = 0 : i64, tpu.core_type = #tpu.core_type<tc>} {
    %c0 = arith.constant 0 : index
    %c0_0 = arith.constant 0 : index
    %0 = vector.load %arg0[%c0, %c0_0] : memref<56x28xf32, #tpu.memory_space<vmem>>, vector<56x28xf32>
    %c0_1 = arith.constant 0 : index
    %c0_2 = arith.constant 0 : index
    %c0_3 = arith.constant 0 : index
    %1 = vector.load %arg2[%c0_1, %c0_2, %c0_3] : memref<5x48x56xf32, #tpu.memory_space<vmem>>, vector<1x48x56xf32>
    %2 = vector.shape_cast %1 : vector<1x48x56xf32> to vector<48x56xf32>
    %cst = arith.constant dense<0.000000e+00> : vector<48x28xf32>
    %3 = tpu.matmul %2, %0, %cst {dimension_numbers = #tpu.dot_dimension_numbers<[1], [0], [0], [1], [0, 0, 1, 1], [], []>} : vector<48x56xf32>, vector<56x28xf32>, vector<48x28xf32> -> vector<48x28xf32>
    %c0_4 = arith.constant 0 : index
    %c0_5 = arith.constant 0 : index
    %c0_6 = arith.constant 0 : index
    %4 = vector.load %arg1[%c0_4, %c0_5, %c0_6] : memref<5x28x240xf32, #tpu.memory_space<vmem>>, vector<1x28x240xf32>
    %5 = vector.shape_cast %4 : vector<1x28x240xf32> to vector<28x240xf32>
    %cst_7 = arith.constant dense<0.000000e+00> : vector<48x240xf32>
    %6 = tpu.matmul %3, %5, %cst_7 {dimension_numbers = #tpu.dot_dimension_numbers<[1], [0], [0], [1], [0, 0, 1, 1], [], []>} : vector<48x28xf32>, vector<28x240xf32>, vector<48x240xf32> -> vector<48x240xf32>
    %c1 = arith.constant 1 : index
    %c0_8 = arith.constant 0 : index
    %c0_9 = arith.constant 0 : index
    %7 = vector.load %arg2[%c1, %c0_8, %c0_9] : memref<5x48x56xf32, #tpu.memory_space<vmem>>, vector<1x48x56xf32>
    %8 = vector.shape_cast %7 : vector<1x48x56xf32> to vector<48x56xf32>
    %cst_10 = arith.constant dense<0.000000e+00> : vector<48x28xf32>
    %9 = tpu.matmul %8, %0, %cst_10 {dimension_numbers = #tpu.dot_dimension_numbers<[1], [0], [0], [1], [0, 0, 1, 1], [], []>} : vector<48x56xf32>, vector<56x28xf32>, vector<48x28xf32> -> vector<48x28xf32>
    %c1_11 = arith.constant 1 : index
    %c0_12 = arith.constant 0 : index
    %c0_13 = arith.constant 0 : index
    %10 = vector.load %arg1[%c1_11, %c0_12, %c0_13] : memref<5x28x240xf32, #tpu.memory_space<vmem>>, vector<1x28x240xf32>
    %11 = vector.shape_cast %10 : vector<1x28x240xf32> to vector<28x240xf32>
    %cst_14 = arith.constant dense<0.000000e+00> : vector<48x240xf32>
    %12 = tpu.matmul %9, %11, %cst_14 {dimension_numbers = #tpu.dot_dimension_numbers<[1], [0], [0], [1], [0, 0, 1, 1], [], []>} : vector<48x28xf32>, vector<28x240xf32>, vector<48x240xf32> -> vector<48x240xf32>
    %13 = arith.addf %6, %12 : vector<48x240xf32>
    %c2 = arith.constant 2 : index
    %c0_15 = arith.constant 0 : index
    %c0_16 = arith.constant 0 : index
    %14 = vector.load %arg2[%c2, %c0_15, %c0_16] : memref<5x48x56xf32, #tpu.memory_space<vmem>>, vector<1x48x56xf32>
    %15 = vector.shape_cast %14 : vector<1x48x56xf32> to vector<48x56xf32>
    %cst_17 = arith.constant dense<0.000000e+00> : vector<48x28xf32>
    %16 = tpu.matmul %15, %0, %cst_17 {dimension_numbers = #tpu.dot_dimension_numbers<[1], [0], [0], [1], [0, 0, 1, 1], [], []>} : vector<48x56xf32>, vector<56x28xf32>, vector<48x28xf32> -> vector<48x28xf32>
    %c2_18 = arith.constant 2 : index
    %c0_19 = arith.constant 0 : index
    %c0_20 = arith.constant 0 : index
    %17 = vector.load %arg1[%c2_18, %c0_19, %c0_20] : memref<5x28x240xf32, #tpu.memory_space<vmem>>, vector<1x28x240xf32>
    %18 = vector.shape_cast %17 : vector<1x28x240xf32> to vector<28x240xf32>
    %cst_21 = arith.constant dense<0.000000e+00> : vector<48x240xf32>
    %19 = tpu.matmul %16, %18, %cst_21 {dimension_numbers = #tpu.dot_dimension_numbers<[1], [0], [0], [1], [0, 0, 1, 1], [], []>} : vector<48x28xf32>, vector<28x240xf32>, vector<48x240xf32> -> vector<48x240xf32>
    %20 = arith.addf %13, %19 : vector<48x240xf32>
    %c3 = arith.constant 3 : index
    %c0_22 = arith.constant 0 : index
    %c0_23 = arith.constant 0 : index
    %21 = vector.load %arg2[%c3, %c0_22, %c0_23] : memref<5x48x56xf32, #tpu.memory_space<vmem>>, vector<1x48x56xf32>
    %22 = vector.shape_cast %21 : vector<1x48x56xf32> to vector<48x56xf32>
    %cst_24 = arith.constant dense<0.000000e+00> : vector<48x28xf32>
    %23 = tpu.matmul %22, %0, %cst_24 {dimension_numbers = #tpu.dot_dimension_numbers<[1], [0], [0], [1], [0, 0, 1, 1], [], []>} : vector<48x56xf32>, vector<56x28xf32>, vector<48x28xf32> -> vector<48x28xf32>
    %c3_25 = arith.constant 3 : index
    %c0_26 = arith.constant 0 : index
    %c0_27 = arith.constant 0 : index
    %24 = vector.load %arg1[%c3_25, %c0_26, %c0_27] : memref<5x28x240xf32, #tpu.memory_space<vmem>>, vector<1x28x240xf32>
    %25 = vector.shape_cast %24 : vector<1x28x240xf32> to vector<28x240xf32>
    %cst_28 = arith.constant dense<0.000000e+00> : vector<48x240xf32>
    %26 = tpu.matmul %23, %25, %cst_28 {dimension_numbers = #tpu.dot_dimension_numbers<[1], [0], [0], [1], [0, 0, 1, 1], [], []>} : vector<48x28xf32>, vector<28x240xf32>, vector<48x240xf32> -> vector<48x240xf32>
    %27 = arith.addf %20, %26 : vector<48x240xf32>
    %c4 = arith.constant 4 : index
    %c0_29 = arith.constant 0 : index
    %c0_30 = arith.constant 0 : index
    %28 = vector.load %arg2[%c4, %c0_29, %c0_30] : memref<5x48x56xf32, #tpu.memory_space<vmem>>, vector<1x48x56xf32>
    %29 = vector.shape_cast %28 : vector<1x48x56xf32> to vector<48x56xf32>
    %cst_31 = arith.constant dense<0.000000e+00> : vector<48x28xf32>
    %30 = tpu.matmul %29, %0, %cst_31 {dimension_numbers = #tpu.dot_dimension_numbers<[1], [0], [0], [1], [0, 0, 1, 1], [], []>} : vector<48x56xf32>, vector<56x28xf32>, vector<48x28xf32> -> vector<48x28xf32>
    %c4_32 = arith.constant 4 : index
    %c0_33 = arith.constant 0 : index
    %c0_34 = arith.constant 0 : index
    %31 = vector.load %arg1[%c4_32, %c0_33, %c0_34] : memref<5x28x240xf32, #tpu.memory_space<vmem>>, vector<1x28x240xf32>
    %32 = vector.shape_cast %31 : vector<1x28x240xf32> to vector<28x240xf32>
    %cst_35 = arith.constant dense<0.000000e+00> : vector<48x240xf32>
    %33 = tpu.matmul %30, %32, %cst_35 {dimension_numbers = #tpu.dot_dimension_numbers<[1], [0], [0], [1], [0, 0, 1, 1], [], []>} : vector<48x28xf32>, vector<28x240xf32>, vector<48x240xf32> -> vector<48x240xf32>
    %34 = arith.addf %27, %33 : vector<48x240xf32>
    %c0_36 = arith.constant 0 : index
    %c0_37 = arith.constant 0 : index
    %c0_38 = arith.constant 0 : index
    %35 = vector.load %arg3[%c0_36, %c0_37, %c0_38] : memref<2x24x48xf32, #tpu.memory_space<vmem>>, vector<1x24x48xf32>
    %36 = vector.shape_cast %35 : vector<1x24x48xf32> to vector<24x48xf32>
    %cst_39 = arith.constant dense<0.000000e+00> : vector<24x240xf32>
    %37 = tpu.matmul %36, %34, %cst_39 {dimension_numbers = #tpu.dot_dimension_numbers<[1], [0], [0], [1], [0, 0, 1, 1], [], []>} : vector<24x48xf32>, vector<48x240xf32>, vector<24x240xf32> -> vector<24x240xf32>
    %c1_40 = arith.constant 1 : index
    %c0_41 = arith.constant 0 : index
    %c0_42 = arith.constant 0 : index
    %38 = vector.load %arg3[%c1_40, %c0_41, %c0_42] : memref<2x24x48xf32, #tpu.memory_space<vmem>>, vector<1x24x48xf32>
    %39 = vector.shape_cast %38 : vector<1x24x48xf32> to vector<24x48xf32>
    %cst_43 = arith.constant dense<0.000000e+00> : vector<24x240xf32>
    %40 = tpu.matmul %39, %34, %cst_43 {dimension_numbers = #tpu.dot_dimension_numbers<[1], [0], [0], [1], [0, 0, 1, 1], [], []>} : vector<24x48xf32>, vector<48x240xf32>, vector<24x240xf32> -> vector<24x240xf32>
    %41 = arith.maximumf %37, %40 : vector<24x240xf32>
    %c0_44 = arith.constant 0 : index
    %c0_45 = arith.constant 0 : index
    %c0_46 = arith.constant 0 : index
    %42 = vector.load %arg4[%c0_44, %c0_45, %c0_46] : memref<2x240x120xf32, #tpu.memory_space<vmem>>, vector<1x240x120xf32>
    %43 = vector.shape_cast %42 : vector<1x240x120xf32> to vector<240x120xf32>
    %cst_47 = arith.constant dense<0.000000e+00> : vector<24x120xf32>
    %44 = tpu.matmul %41, %43, %cst_47 {dimension_numbers = #tpu.dot_dimension_numbers<[1], [0], [0], [1], [0, 0, 1, 1], [], []>} : vector<24x240xf32>, vector<240x120xf32>, vector<24x120xf32> -> vector<24x120xf32>
    %c1_48 = arith.constant 1 : index
    %c0_49 = arith.constant 0 : index
    %c0_50 = arith.constant 0 : index
    %45 = vector.load %arg4[%c1_48, %c0_49, %c0_50] : memref<2x240x120xf32, #tpu.memory_space<vmem>>, vector<1x240x120xf32>
    %46 = vector.shape_cast %45 : vector<1x240x120xf32> to vector<240x120xf32>
    %cst_51 = arith.constant dense<0.000000e+00> : vector<24x120xf32>
    %47 = tpu.matmul %41, %46, %cst_51 {dimension_numbers = #tpu.dot_dimension_numbers<[1], [0], [0], [1], [0, 0, 1, 1], [], []>} : vector<24x240xf32>, vector<240x120xf32>, vector<24x120xf32> -> vector<24x120xf32>
    %48 = arith.maximumf %44, %47 : vector<24x120xf32>
    %c0_52 = arith.constant 0 : index
    %c0_53 = arith.constant 0 : index
    %49 = vector.load %arg5[%c0_52, %c0_53] : memref<1x120xf32, #tpu.memory_space<vmem>>, vector<1x120xf32>
    %50 = vector.broadcast %49 : vector<1x120xf32> to vector<24x120xf32>
    %51 = arith.addf %48, %50 : vector<24x120xf32>
    %cst_54 = arith.constant 0.000000e+00 : f32
    %52 = vector.broadcast %cst_54 : f32 to vector<24x120xf32>
    %53 = arith.maximumf %51, %52 : vector<24x120xf32>
    %c0_55 = arith.constant 0 : index
    %c0_56 = arith.constant 0 : index
    %c0_57 = arith.constant 0 : index
    %54 = vector.load %arg7[%c0_55, %c0_56, %c0_57] : memref<5x16x24xf32, #tpu.memory_space<vmem>>, vector<1x16x24xf32>
    %55 = vector.shape_cast %54 : vector<1x16x24xf32> to vector<16x24xf32>
    %cst_58 = arith.constant dense<0.000000e+00> : vector<16x120xf32>
    %56 = tpu.matmul %55, %53, %cst_58 {dimension_numbers = #tpu.dot_dimension_numbers<[1], [0], [0], [1], [0, 0, 1, 1], [], []>} : vector<16x24xf32>, vector<24x120xf32>, vector<16x120xf32> -> vector<16x120xf32>
    %c0_59 = arith.constant 0 : index
    %c0_60 = arith.constant 0 : index
    %c0_61 = arith.constant 0 : index
    %57 = vector.load %arg6[%c0_59, %c0_60, %c0_61] : memref<5x120x160xf32, #tpu.memory_space<vmem>>, vector<1x120x160xf32>
    %58 = vector.shape_cast %57 : vector<1x120x160xf32> to vector<120x160xf32>
    %cst_62 = arith.constant dense<0.000000e+00> : vector<16x160xf32>
    %59 = tpu.matmul %56, %58, %cst_62 {dimension_numbers = #tpu.dot_dimension_numbers<[1], [0], [0], [1], [0, 0, 1, 1], [], []>} : vector<16x120xf32>, vector<120x160xf32>, vector<16x160xf32> -> vector<16x160xf32>
    %c1_63 = arith.constant 1 : index
    %c0_64 = arith.constant 0 : index
    %c0_65 = arith.constant 0 : index
    %60 = vector.load %arg7[%c1_63, %c0_64, %c0_65] : memref<5x16x24xf32, #tpu.memory_space<vmem>>, vector<1x16x24xf32>
    %61 = vector.shape_cast %60 : vector<1x16x24xf32> to vector<16x24xf32>
    %cst_66 = arith.constant dense<0.000000e+00> : vector<16x120xf32>
    %62 = tpu.matmul %61, %53, %cst_66 {dimension_numbers = #tpu.dot_dimension_numbers<[1], [0], [0], [1], [0, 0, 1, 1], [], []>} : vector<16x24xf32>, vector<24x120xf32>, vector<16x120xf32> -> vector<16x120xf32>
    %c1_67 = arith.constant 1 : index
    %c0_68 = arith.constant 0 : index
    %c0_69 = arith.constant 0 : index
    %63 = vector.load %arg6[%c1_67, %c0_68, %c0_69] : memref<5x120x160xf32, #tpu.memory_space<vmem>>, vector<1x120x160xf32>
    %64 = vector.shape_cast %63 : vector<1x120x160xf32> to vector<120x160xf32>
    %cst_70 = arith.constant dense<0.000000e+00> : vector<16x160xf32>
    %65 = tpu.matmul %62, %64, %cst_70 {dimension_numbers = #tpu.dot_dimension_numbers<[1], [0], [0], [1], [0, 0, 1, 1], [], []>} : vector<16x120xf32>, vector<120x160xf32>, vector<16x160xf32> -> vector<16x160xf32>
    %66 = arith.addf %59, %65 : vector<16x160xf32>
    %c2_71 = arith.constant 2 : index
    %c0_72 = arith.constant 0 : index
    %c0_73 = arith.constant 0 : index
    %67 = vector.load %arg7[%c2_71, %c0_72, %c0_73] : memref<5x16x24xf32, #tpu.memory_space<vmem>>, vector<1x16x24xf32>
    %68 = vector.shape_cast %67 : vector<1x16x24xf32> to vector<16x24xf32>
    %cst_74 = arith.constant dense<0.000000e+00> : vector<16x120xf32>
    %69 = tpu.matmul %68, %53, %cst_74 {dimension_numbers = #tpu.dot_dimension_numbers<[1], [0], [0], [1], [0, 0, 1, 1], [], []>} : vector<16x24xf32>, vector<24x120xf32>, vector<16x120xf32> -> vector<16x120xf32>
    %c2_75 = arith.constant 2 : index
    %c0_76 = arith.constant 0 : index
    %c0_77 = arith.constant 0 : index
    %70 = vector.load %arg6[%c2_75, %c0_76, %c0_77] : memref<5x120x160xf32, #tpu.memory_space<vmem>>, vector<1x120x160xf32>
    %71 = vector.shape_cast %70 : vector<1x120x160xf32> to vector<120x160xf32>
    %cst_78 = arith.constant dense<0.000000e+00> : vector<16x160xf32>
    %72 = tpu.matmul %69, %71, %cst_78 {dimension_numbers = #tpu.dot_dimension_numbers<[1], [0], [0], [1], [0, 0, 1, 1], [], []>} : vector<16x120xf32>, vector<120x160xf32>, vector<16x160xf32> -> vector<16x160xf32>
    %73 = arith.addf %66, %72 : vector<16x160xf32>
    %c3_79 = arith.constant 3 : index
    %c0_80 = arith.constant 0 : index
    %c0_81 = arith.constant 0 : index
    %74 = vector.load %arg7[%c3_79, %c0_80, %c0_81] : memref<5x16x24xf32, #tpu.memory_space<vmem>>, vector<1x16x24xf32>
    %75 = vector.shape_cast %74 : vector<1x16x24xf32> to vector<16x24xf32>
    %cst_82 = arith.constant dense<0.000000e+00> : vector<16x120xf32>
    %76 = tpu.matmul %75, %53, %cst_82 {dimension_numbers = #tpu.dot_dimension_numbers<[1], [0], [0], [1], [0, 0, 1, 1], [], []>} : vector<16x24xf32>, vector<24x120xf32>, vector<16x120xf32> -> vector<16x120xf32>
    %c3_83 = arith.constant 3 : index
    %c0_84 = arith.constant 0 : index
    %c0_85 = arith.constant 0 : index
    %77 = vector.load %arg6[%c3_83, %c0_84, %c0_85] : memref<5x120x160xf32, #tpu.memory_space<vmem>>, vector<1x120x160xf32>
    %78 = vector.shape_cast %77 : vector<1x120x160xf32> to vector<120x160xf32>
    %cst_86 = arith.constant dense<0.000000e+00> : vector<16x160xf32>
    %79 = tpu.matmul %76, %78, %cst_86 {dimension_numbers = #tpu.dot_dimension_numbers<[1], [0], [0], [1], [0, 0, 1, 1], [], []>} : vector<16x120xf32>, vector<120x160xf32>, vector<16x160xf32> -> vector<16x160xf32>
    %80 = arith.addf %73, %79 : vector<16x160xf32>
    %c4_87 = arith.constant 4 : index
    %c0_88 = arith.constant 0 : index
    %c0_89 = arith.constant 0 : index
    %81 = vector.load %arg7[%c4_87, %c0_88, %c0_89] : memref<5x16x24xf32, #tpu.memory_space<vmem>>, vector<1x16x24xf32>
    %82 = vector.shape_cast %81 : vector<1x16x24xf32> to vector<16x24xf32>
    %cst_90 = arith.constant dense<0.000000e+00> : vector<16x120xf32>
    %83 = tpu.matmul %82, %53, %cst_90 {dimension_numbers = #tpu.dot_dimension_numbers<[1], [0], [0], [1], [0, 0, 1, 1], [], []>} : vector<16x24xf32>, vector<24x120xf32>, vector<16x120xf32> -> vector<16x120xf32>
    %c4_91 = arith.constant 4 : index
    %c0_92 = arith.constant 0 : index
    %c0_93 = arith.constant 0 : index
    %84 = vector.load %arg6[%c4_91, %c0_92, %c0_93] : memref<5x120x160xf32, #tpu.memory_space<vmem>>, vector<1x120x160xf32>
    %85 = vector.shape_cast %84 : vector<1x120x160xf32> to vector<120x160xf32>
    %cst_94 = arith.constant dense<0.000000e+00> : vector<16x160xf32>
    %86 = tpu.matmul %83, %85, %cst_94 {dimension_numbers = #tpu.dot_dimension_numbers<[1], [0], [0], [1], [0, 0, 1, 1], [], []>} : vector<16x120xf32>, vector<120x160xf32>, vector<16x160xf32> -> vector<16x160xf32>
    %87 = arith.addf %80, %86 : vector<16x160xf32>
    %c0_95 = arith.constant 0 : index
    %c0_96 = arith.constant 0 : index
    %c0_97 = arith.constant 0 : index
    %88 = vector.load %arg8[%c0_95, %c0_96, %c0_97] : memref<2x8x16xf32, #tpu.memory_space<vmem>>, vector<1x8x16xf32>
    %89 = vector.shape_cast %88 : vector<1x8x16xf32> to vector<8x16xf32>
    %cst_98 = arith.constant dense<0.000000e+00> : vector<8x160xf32>
    %90 = tpu.matmul %89, %87, %cst_98 {dimension_numbers = #tpu.dot_dimension_numbers<[1], [0], [0], [1], [0, 0, 1, 1], [], []>} : vector<8x16xf32>, vector<16x160xf32>, vector<8x160xf32> -> vector<8x160xf32>
    %c1_99 = arith.constant 1 : index
    %c0_100 = arith.constant 0 : index
    %c0_101 = arith.constant 0 : index
    %91 = vector.load %arg8[%c1_99, %c0_100, %c0_101] : memref<2x8x16xf32, #tpu.memory_space<vmem>>, vector<1x8x16xf32>
    %92 = vector.shape_cast %91 : vector<1x8x16xf32> to vector<8x16xf32>
    %cst_102 = arith.constant dense<0.000000e+00> : vector<8x160xf32>
    %93 = tpu.matmul %92, %87, %cst_102 {dimension_numbers = #tpu.dot_dimension_numbers<[1], [0], [0], [1], [0, 0, 1, 1], [], []>} : vector<8x16xf32>, vector<16x160xf32>, vector<8x160xf32> -> vector<8x160xf32>
    %94 = arith.maximumf %90, %93 : vector<8x160xf32>
    %c0_103 = arith.constant 0 : index
    %c0_104 = arith.constant 0 : index
    %c0_105 = arith.constant 0 : index
    %95 = vector.load %arg9[%c0_103, %c0_104, %c0_105] : memref<2x160x80xf32, #tpu.memory_space<vmem>>, vector<1x160x80xf32>
    %96 = vector.shape_cast %95 : vector<1x160x80xf32> to vector<160x80xf32>
    %cst_106 = arith.constant dense<0.000000e+00> : vector<8x80xf32>
    %97 = tpu.matmul %94, %96, %cst_106 {dimension_numbers = #tpu.dot_dimension_numbers<[1], [0], [0], [1], [0, 0, 1, 1], [], []>} : vector<8x160xf32>, vector<160x80xf32>, vector<8x80xf32> -> vector<8x80xf32>
    %c1_107 = arith.constant 1 : index
    %c0_108 = arith.constant 0 : index
    %c0_109 = arith.constant 0 : index
    %98 = vector.load %arg9[%c1_107, %c0_108, %c0_109] : memref<2x160x80xf32, #tpu.memory_space<vmem>>, vector<1x160x80xf32>
    %99 = vector.shape_cast %98 : vector<1x160x80xf32> to vector<160x80xf32>
    %cst_110 = arith.constant dense<0.000000e+00> : vector<8x80xf32>
    %100 = tpu.matmul %94, %99, %cst_110 {dimension_numbers = #tpu.dot_dimension_numbers<[1], [0], [0], [1], [0, 0, 1, 1], [], []>} : vector<8x160xf32>, vector<160x80xf32>, vector<8x80xf32> -> vector<8x80xf32>
    %101 = arith.maximumf %97, %100 : vector<8x80xf32>
    %c0_111 = arith.constant 0 : index
    %c0_112 = arith.constant 0 : index
    %102 = vector.load %arg10[%c0_111, %c0_112] : memref<1x80xf32, #tpu.memory_space<vmem>>, vector<1x80xf32>
    %103 = vector.broadcast %102 : vector<1x80xf32> to vector<8x80xf32>
    %104 = arith.addf %101, %103 : vector<8x80xf32>
    %cst_113 = arith.constant 0.000000e+00 : f32
    %105 = vector.broadcast %cst_113 : f32 to vector<8x80xf32>
    %106 = arith.maximumf %104, %105 : vector<8x80xf32>
    %c0_114 = arith.constant 0 : index
    %c0_115 = arith.constant 0 : index
    %c0_116 = arith.constant 0 : index
    %107 = vector.load %arg12[%c0_114, %c0_115, %c0_116] : memref<4x2x8xf32, #tpu.memory_space<vmem>>, vector<1x2x8xf32>
    %108 = vector.shape_cast %107 : vector<1x2x8xf32> to vector<2x8xf32>
    %cst_117 = arith.constant dense<0.000000e+00> : vector<2x80xf32>
    %109 = tpu.matmul %108, %106, %cst_117 {dimension_numbers = #tpu.dot_dimension_numbers<[1], [0], [0], [1], [0, 0, 1, 1], [], []>} : vector<2x8xf32>, vector<8x80xf32>, vector<2x80xf32> -> vector<2x80xf32>
    %c0_118 = arith.constant 0 : index
    %c0_119 = arith.constant 0 : index
    %c0_120 = arith.constant 0 : index
    %110 = vector.load %arg11[%c0_118, %c0_119, %c0_120] : memref<4x80x50xf32, #tpu.memory_space<vmem>>, vector<1x80x50xf32>
    %111 = vector.shape_cast %110 : vector<1x80x50xf32> to vector<80x50xf32>
    %cst_121 = arith.constant dense<0.000000e+00> : vector<2x50xf32>
    %112 = tpu.matmul %109, %111, %cst_121 {dimension_numbers = #tpu.dot_dimension_numbers<[1], [0], [0], [1], [0, 0, 1, 1], [], []>} : vector<2x80xf32>, vector<80x50xf32>, vector<2x50xf32> -> vector<2x50xf32>
    %c1_122 = arith.constant 1 : index
    %c0_123 = arith.constant 0 : index
    %c0_124 = arith.constant 0 : index
    %113 = vector.load %arg12[%c1_122, %c0_123, %c0_124] : memref<4x2x8xf32, #tpu.memory_space<vmem>>, vector<1x2x8xf32>
    %114 = vector.shape_cast %113 : vector<1x2x8xf32> to vector<2x8xf32>
    %cst_125 = arith.constant dense<0.000000e+00> : vector<2x80xf32>
    %115 = tpu.matmul %114, %106, %cst_125 {dimension_numbers = #tpu.dot_dimension_numbers<[1], [0], [0], [1], [0, 0, 1, 1], [], []>} : vector<2x8xf32>, vector<8x80xf32>, vector<2x80xf32> -> vector<2x80xf32>
    %c1_126 = arith.constant 1 : index
    %c0_127 = arith.constant 0 : index
    %c0_128 = arith.constant 0 : index
    %116 = vector.load %arg11[%c1_126, %c0_127, %c0_128] : memref<4x80x50xf32, #tpu.memory_space<vmem>>, vector<1x80x50xf32>
    %117 = vector.shape_cast %116 : vector<1x80x50xf32> to vector<80x50xf32>
    %cst_129 = arith.constant dense<0.000000e+00> : vector<2x50xf32>
    %118 = tpu.matmul %115, %117, %cst_129 {dimension_numbers = #tpu.dot_dimension_numbers<[1], [0], [0], [1], [0, 0, 1, 1], [], []>} : vector<2x80xf32>, vector<80x50xf32>, vector<2x50xf32> -> vector<2x50xf32>
    %119 = arith.addf %112, %118 : vector<2x50xf32>
    %c2_130 = arith.constant 2 : index
    %c0_131 = arith.constant 0 : index
    %c0_132 = arith.constant 0 : index
    %120 = vector.load %arg12[%c2_130, %c0_131, %c0_132] : memref<4x2x8xf32, #tpu.memory_space<vmem>>, vector<1x2x8xf32>
    %121 = vector.shape_cast %120 : vector<1x2x8xf32> to vector<2x8xf32>
    %cst_133 = arith.constant dense<0.000000e+00> : vector<2x80xf32>
    %122 = tpu.matmul %121, %106, %cst_133 {dimension_numbers = #tpu.dot_dimension_numbers<[1], [0], [0], [1], [0, 0, 1, 1], [], []>} : vector<2x8xf32>, vector<8x80xf32>, vector<2x80xf32> -> vector<2x80xf32>
    %c2_134 = arith.constant 2 : index
    %c0_135 = arith.constant 0 : index
    %c0_136 = arith.constant 0 : index
    %123 = vector.load %arg11[%c2_134, %c0_135, %c0_136] : memref<4x80x50xf32, #tpu.memory_space<vmem>>, vector<1x80x50xf32>
    %124 = vector.shape_cast %123 : vector<1x80x50xf32> to vector<80x50xf32>
    %cst_137 = arith.constant dense<0.000000e+00> : vector<2x50xf32>
    %125 = tpu.matmul %122, %124, %cst_137 {dimension_numbers = #tpu.dot_dimension_numbers<[1], [0], [0], [1], [0, 0, 1, 1], [], []>} : vector<2x80xf32>, vector<80x50xf32>, vector<2x50xf32> -> vector<2x50xf32>
    %126 = arith.addf %119, %125 : vector<2x50xf32>
    %c3_138 = arith.constant 3 : index
    %c0_139 = arith.constant 0 : index
    %c0_140 = arith.constant 0 : index
    %127 = vector.load %arg12[%c3_138, %c0_139, %c0_140] : memref<4x2x8xf32, #tpu.memory_space<vmem>>, vector<1x2x8xf32>
    %128 = vector.shape_cast %127 : vector<1x2x8xf32> to vector<2x8xf32>
    %cst_141 = arith.constant dense<0.000000e+00> : vector<2x80xf32>
    %129 = tpu.matmul %128, %106, %cst_141 {dimension_numbers = #tpu.dot_dimension_numbers<[1], [0], [0], [1], [0, 0, 1, 1], [], []>} : vector<2x8xf32>, vector<8x80xf32>, vector<2x80xf32> -> vector<2x80xf32>
    %c3_142 = arith.constant 3 : index
    %c0_143 = arith.constant 0 : index
    %c0_144 = arith.constant 0 : index
    %130 = vector.load %arg11[%c3_142, %c0_143, %c0_144] : memref<4x80x50xf32, #tpu.memory_space<vmem>>, vector<1x80x50xf32>
    %131 = vector.shape_cast %130 : vector<1x80x50xf32> to vector<80x50xf32>
    %cst_145 = arith.constant dense<0.000000e+00> : vector<2x50xf32>
    %132 = tpu.matmul %129, %131, %cst_145 {dimension_numbers = #tpu.dot_dimension_numbers<[1], [0], [0], [1], [0, 0, 1, 1], [], []>} : vector<2x80xf32>, vector<80x50xf32>, vector<2x50xf32> -> vector<2x50xf32>
    %133 = arith.addf %126, %132 : vector<2x50xf32>
    %c0_146 = arith.constant 0 : index
    %c0_147 = arith.constant 0 : index
    %134 = vector.load %arg13[%c0_146, %c0_147] : memref<1x50xf32, #tpu.memory_space<vmem>>, vector<1x50xf32>
    %135 = vector.broadcast %134 : vector<1x50xf32> to vector<2x50xf32>
    %136 = arith.addf %133, %135 : vector<2x50xf32>
    %cst_148 = arith.constant 0.000000e+00 : f32
    %137 = vector.broadcast %cst_148 : f32 to vector<2x50xf32>
    %138 = arith.maximumf %136, %137 : vector<2x50xf32>
    %c0_149 = arith.constant 0 : index
    %c0_150 = arith.constant 0 : index
    %139 = vector.load %arg14[%c0_149, %c0_150] : memref<50x10xf32, #tpu.memory_space<vmem>>, vector<50x10xf32>
    %cst_151 = arith.constant dense<0.000000e+00> : vector<2x10xf32>
    %140 = tpu.matmul %138, %139, %cst_151 {dimension_numbers = #tpu.dot_dimension_numbers<[1], [0], [0], [1], [0, 0, 1, 1], [], []>} : vector<2x50xf32>, vector<50x10xf32>, vector<2x10xf32> -> vector<2x10xf32>
    %c0_152 = arith.constant 0 : index
    %c0_153 = arith.constant 0 : index
    %141 = vector.load %arg15[%c0_152, %c0_153] : memref<1x10xf32, #tpu.memory_space<vmem>>, vector<1x10xf32>
    %142 = vector.broadcast %141 : vector<1x10xf32> to vector<2x10xf32>
    %143 = arith.addf %140, %142 : vector<2x10xf32>
    %cst_154 = arith.constant dense<0xFF800000> : vector<2xf32>
    %144 = vector.multi_reduction <maximumf>, %143, %cst_154 [1] : vector<2x10xf32> to vector<2xf32>
    %145 = vector.shape_cast %144 : vector<2xf32> to vector<2x1xf32>
    %146 = vector.broadcast %145 : vector<2x1xf32> to vector<2x10xf32>
    %147 = arith.subf %143, %146 : vector<2x10xf32>
    %148 = math.exp %147 : vector<2x10xf32>
    %cst_155 = arith.constant dense<0.000000e+00> : vector<2xf32>
    %149 = vector.multi_reduction <add>, %148, %cst_155 [1] : vector<2x10xf32> to vector<2xf32>
    %150 = vector.shape_cast %149 : vector<2xf32> to vector<2x1xf32>
    %151 = vector.broadcast %150 : vector<2x1xf32> to vector<2x10xf32>
    %152 = arith.divf %148, %151 : vector<2x10xf32>
    %c0_156 = arith.constant 0 : index
    %c0_157 = arith.constant 0 : index
    %153 = vector.load %arg16[%c0_156, %c0_157] : memref<2x10xf32, #tpu.memory_space<vmem>>, vector<2x10xf32>
    tpu.vector_store %arg16[%c0_156, %c0_157], %152 {strides = array<i32>} : memref<2x10xf32, #tpu.memory_space<vmem>>, vector<2x10xf32>,
    return
  }
}

</mosaic_0001>

<bundles_post_ra>
// kernel: net_forward.1
= control target key start
LH: loop header
LB: loop body
LE: loop exit
PB: predicated region body
PF: predicated region fallthrough
CT: control target
= control target key end

     0   :  { %s7042_s0 = inlined_call_operand.vmem [shape: f32[56,28], index: 0, kind: input, shape index: {}]   ;;  %s7043_s1 = inlined_call_operand.vmem [shape: f32[5,28,240], index: 1, kind: input, shape index: {}]   ;;  %s7044_s2 = inlined_call_operand.vmem [shape: f32[5,48,56], index: 2, kind: input, shape index: {}]   ;;  %s7045_s3 = inlined_call_operand.vmem [shape: f32[2,24,48], index: 3, kind: input, shape index: {}]   ;;  %s7046_s4 = inlined_call_operand.vmem [shape: f32[2,240,120], index: 4, kind: input, shape index: {}]   ;;  %s7047_s5 = inlined_call_operand.vmem [shape: f32[1,120], index: 5, kind: input, shape index: {}]   ;;  %s7048_s6 = inlined_call_operand.vmem [shape: f32[5,120,160], index: 6, kind: input, shape index: {}]   ;;  %s7049_s7 = inlined_call_operand.vmem [shape: f32[5,16,24], index: 7, kind: input, shape index: {}]   ;;  %s7050_s8 = inlined_call_operand.vmem [shape: f32[2,8,16], index: 8, kind: input, shape index: {}]   ;;  %s7051_s9 = inlined_call_operand.vmem [shape: f32[2,160,80], index: 9, kind: input, shape index: {}]   ;;  %s7052_s10 = inlined_call_operand.vmem [shape: f32[1,80], index: 10, kind: input, shape index: {}]   ;;  %s7053_s11 = inlined_call_operand.vmem [shape: f32[4,80,50], index: 11, kind: input, shape index: {}]   ;;  %s7054_s12 = inlined_call_operand.vmem [shape: f32[4,2,8], index: 12, kind: input, shape index: {}]   ;;  %s7055_s13 = inlined_call_operand.vmem [shape: f32[1,50], index: 13, kind: input, shape index: {}]   ;;  %s7056_s14 = inlined_call_operand.vmem [shape: f32[50,10], index: 14, kind: input, shape index: {}]   ;;  %s7057_s15 = inlined_call_operand.vmem [shape: f32[1,10], index: 15, kind: input, shape index: {}]   ;;  %s7058_s16 = inlined_call_operand.hbm [shape: f32[2,10], index: 16, kind: output, shape index: {}]  }
   0x1   :  { %7060 = sst [smem:[#allocation5_spill]] %s7042_s0 }
   0x2   :  { %s7061_s23 = sld [smem:[#allocation5_spill]]  ;;  %vm67_vm0 = vcmask 457728   ;;  %v3936_v8 = vld [vmem:[%s7044_s2 + $0x30] sm:$0xff]  ;;  %v61_v9 = vld [vmem:[%s7044_s2] sm:$0xff]  ;;  %v3949_v12 = vld [vmem:[%s7043_s1 + $0x48] sm:$0xff] }
   0x3   :  { %4508 = vmatprep.mubr.msk.f32.mxu1 %vm67_vm0, %v3936_v8  ;;  %4485 = vmatprep.mubr.msk.f32.mxu0 %vm67_vm0, %v61_v9  ;;  %v3951_v13 = vld [vmem:[%s7043_s1 + $0x58] sm:$0xff]  ;;  %v3938_v15 = vld [vmem:[%s7044_s2 + $0x40] sm:$0xff]  ;;  %v62_v16 = vld [vmem:[%s7044_s2 + $0x8] sm:$0xff] }
   0x4   :  { %v3937_v14 = vld [vmem:[%s7044_s2 + $0x38] sm:$0xff] }
   0x8   :  { %v54_v0 = vld [vmem:[%s7061_s23] sm:$0xff]  ;;  %v55_v1 = vld [vmem:[%s7061_s23 + $0x8] sm:$0xff]  ;;  %v56_v2 = vld [vmem:[%s7061_s23 + $0x10] sm:$0xff] }
   0x9   :  { %v5477_v3 = vpack.c.bf16 %v55_v1, %v54_v0  ;;  %v57_v4 = vld [vmem:[%s7061_s23 + $0x18] sm:$0xff]  ;;  %v58_v6 = vld [vmem:[%s7061_s23 + $0x20] sm:$0xff]  ;;  %v59_v7 = vld [vmem:[%s7061_s23 + $0x28] sm:$0xff] }
   0xa   :  { %v5482_v5 = vpack.c.bf16 %v57_v4, %v56_v2  ;;  %v5501_v10 = vpack.c.bf16 %v59_v7, %v58_v6  ;;  %v5512_v11 = vld [vmem:[%s7061_s23 + $0x30] sm:$0xff] }
   0xb   :  { %4773 = vmatprep.subr.bf16.mxu1 %v5477_v3  ;;  %4761 = vmatprep.subr.bf16.mxu0 %v5477_v3 }
   0xc   :  { %4775 = vmatpush3.bf16.msra.mxu1 %v5477_v3  ;;  %4763 = vmatpush3.bf16.msra.mxu0 %v5477_v3 }
   0xd   :  { %4777 = vmatprep.subr.bf16.mxu1 %v5482_v5  ;;  %4765 = vmatprep.subr.bf16.mxu0 %v5482_v5 }
  0x10   :  { %4779 = vmatpush3.bf16.msra.mxu1 %v5482_v5  ;;  %4767 = vmatpush3.bf16.msra.mxu0 %v5482_v5 }
  0x11   :  { %4781 = vmatprep.subr.bf16.mxu1 %v5501_v10  ;;  %4769 = vmatprep.subr.bf16.mxu0 %v5501_v10 }
  0x14   :  { %4783 = vmatpush3.bf16.msra.mxu1 %v5501_v10  ;;  %4771 = vmatpush3.bf16.msra.mxu0 %v5501_v10 }
  0x15   :  { %4506 = vmatprep.subr.mxu1 %v5512_v11  ;;  %4483 = vmatprep.subr.mxu0 %v5512_v11 }
  0x16   :  { %21 = vsyncpa [#allocation3], 0  ;;  %v63_v17 = vld [vmem:[%s7044_s2 + $0x10] sm:$0xff]  ;;  %v4784_v18 = vpack.c.bf16 %v3951_v13, %v3949_v12  ;;  %v3948_v19 = vld [vmem:[%s7043_s1 + $0x40] sm:$0xff]  ;;  %vm337_vm1 = vcmask 1043456   ;;  %vm5378_vm2 = vmmov 1  }
  0x17   :  { %v3950_v20 = vld [vmem:[%s7043_s1 + $0x50] sm:$0xff]  ;;  %v3953_v21 = vld [vmem:[%s7043_s1 + $0x68] sm:$0xff]  ;;  %v3955_v22 = vld [vmem:[%s7043_s1 + $0x78] sm:$0xf]  ;;  %v5379_v53 = vmov 0.0   ;;  %vm318_vm4 = vcmask 228352  }
  0x18   :  { %4507 = vmatpush3.msra.mxu1 %v5512_v11  ;;  %4484 = vmatpush3.msra.mxu0 %v5512_v11  ;;  %v3939_v23 = vld [vmem:[%s7044_s2 + $0x48] sm:$0xff]  ;;  %v3940_v24 = vld [vmem:[%s7044_s2 + $0x50] sm:$0xff]  ;;  %v64_v25 = vld [vmem:[%s7044_s2 + $0x18] sm:$0xff]  ;;  %v4786_v26 = vpack.c.bf16 %v3950_v20, %v3948_v19  ;;  %v4788_v28 = vpack.c.bf16 %v3955_v22, %v3953_v21  ;;  %vm1371_vm5 = vcmask 392192   ;;  %vm1596_vm6 = vcmask 916480  }
  0x19   :  { %4509 = vmatmul.mubr.msk.f32.vlgmr.msra.gmra.mrb[0].mxu1 %vm67_vm0, %v3937_v14  ;;  %4486 = vmatmul.mubr.msk.f32.vlgmr.msra.gmra.mrb[0].mxu0 %vm67_vm0, %v62_v16  ;;  %v65_v27 = vld [vmem:[%s7044_s2 + $0x20] sm:$0xff]  ;;  %v3954_v30 = vld [vmem:[%s7043_s1 + $0x70] sm:$0xf]  ;;  %vm5578_vm3 = vmpackc.low %vm337_vm1, %vm5378_vm2  ;;  %vm1815_vm7 = vcmask 195584   ;;  %vm2042_vm8 = vcmask 982016   ;;  %vm2816_vm9 = vcmask 130048  }
  0x1a   :  { %4511 = vmatprep.mubr.msk.f32.mxu1 %vm67_vm0, %v3938_v15  ;;  %4488 = vmatprep.mubr.msk.f32.mxu0 %vm67_vm0, %v63_v17  ;;  %v3952_v29 = vld [vmem:[%s7043_s1 + $0x60] sm:$0xff]  ;;  %v3941_v32 = vld [vmem:[%s7044_s2 + $0x58] sm:$0xff]  ;;  %v66_v33 = vld [vmem:[%s7044_s2 + $0x28] sm:$0xff]  ;;  %vm2989_vm10 = vcmask 261120   ;;  %vm5381_vm11 = vmmov 0   ;;  %vm3165_vm12 = vcmask 64512  }
  0x1b   :  { %4805 = vmatprep.subr.bf16.mxu1 %v5477_v3  ;;  %4785 = vmatprep.subr.bf16.mxu0 %v4784_v18  ;;  %v3972_v34 = vld [vmem:[%s7044_s2 + $0x60] sm:$0xff]  ;;  %v4791_v35 = vpack.c.bf16 %v3954_v30, %v3952_v29  ;;  %v3973_v36 = vld [vmem:[%s7044_s2 + $0x68] sm:$0xff]  ;;  %v3974_v37 = vld [vmem:[%s7044_s2 + $0x70] sm:$0xff]  ;;  %vm3335_vm13 = vcmask 654336   ;;  %vm3829_vm14 = vcmask 1041408   ;;  %vm3825_vm15 = vcmask 408576  }
  0x1c   :  { %4807 = vmatpush3.bf16.msra.mxu1 %v5477_v3  ;;  %4787 = vmatpush1.bf16.msra.mxu0 %v4786_v26  ;;  %v3975_v38 = vld [vmem:[%s7044_s2 + $0x78] sm:$0xff]  ;;  %v3976_v39 = vld [vmem:[%s7044_s2 + $0x80] sm:$0xff]  ;;  %v3977_v40 = vld [vmem:[%s7044_s2 + $0x88] sm:$0xff] }
  0x1d   :  { %4512 = vmatmul.mubr.msk.f32.gmra.mrb[2].mxu1 %vm67_vm0, %v3939_v23  ;;  %4809 = vmatprep.subr.bf16.mxu1 %v5482_v5  ;;  %v4000_v41 = vld [vmem:[%s7044_s2 + $0x90] sm:$0xff]  ;;  %v4001_v42 = vld [vmem:[%s7044_s2 + $0x98] sm:$0xff]  ;;  %v4002_v43 = vld [vmem:[%s7044_s2 + $0xa0] sm:$0xff] }
  0x1e   :  { %4514 = vmatprep.mubr.msk.f32.mxu1 %vm67_vm0, %v3940_v24  ;;  %4489 = vmatmul.mubr.msk.f32.gmra.mrb[2].mxu0 %vm67_vm0, %v64_v25  ;;  %v4003_v44 = vld [vmem:[%s7044_s2 + $0xa8] sm:$0xff]  ;;  %v4004_v45 = vld [vmem:[%s7044_s2 + $0xb0] sm:$0xff]  ;;  %v4005_v46 = vld [vmem:[%s7044_s2 + $0xb8] sm:$0xff] }
  0x1f   :  { %4491 = vmatprep.mubr.msk.f32.mxu0 %vm67_vm0, %v65_v27  ;;  %4790 = vmatprep.subr.msk.bf16.mxu0 %vm5578_vm3, %v4788_v28  ;;  %v4028_v47 = vld [vmem:[%s7044_s2 + $0xc0] sm:$0xff]  ;;  %v4029_v48 = vld [vmem:[%s7044_s2 + $0xc8] sm:$0xff]  ;;  %v4030_v49 = vld [vmem:[%s7044_s2 + $0xd0] sm:$0xff] }
  0x20   :  { %4811 = vmatpush3.bf16.msra.mxu1 %v5482_v5  ;;  %4793 = vmatpush1.bf16.msk.msra.mxu0 %vm5578_vm3, %v4791_v35  ;;  %v4031_v50 = vld [vmem:[%s7044_s2 + $0xd8] sm:$0xff]  ;;  %v4032_v51 = vld [vmem:[%s7044_s2 + $0xe0] sm:$0xff]  ;;  %v4033_v52 = vld [vmem:[%s7044_s2 + $0xe8] sm:$0xff] }
  0x21   :  { %4515 = vmatmul.mubr.msk.f32.gmra.mrb[4].mxu1 %vm67_vm0, %v3941_v32  ;;  %4813 = vmatprep.subr.bf16.mxu1 %v5501_v10  ;;  %v182_v54 = vld [vmem:[%s7043_s1 + $0x8] sm:$0xff]  ;;  %v184_v55 = vld [vmem:[%s7043_s1 + $0x18] sm:$0xff]  ;;  %v181_v57 = vld [vmem:[%s7043_s1] sm:$0xff] }
  0x22   :  { %4492 = vmatmul.mubr.msk.f32.gmra.mrb[4].mxu0 %vm67_vm0, %v66_v33  ;;  %4531 = vmatprep.mubr.msk.f32.mxu1 %vm67_vm0, %v3972_v34  ;;  %v4794_v56 = vpack.c.bf16 %v184_v55, %v182_v54  ;;  %v183_v58 = vld [vmem:[%s7043_s1 + $0x10] sm:$0xff]  ;;  %v186_v59 = vld [vmem:[%s7043_s1 + $0x28] sm:$0xff]  ;;  %v188_v60 = vld [vmem:[%s7043_s1 + $0x38] sm:$0xf] }
  0x23   :  { %408 = vmatprep.mubr.f32.mxu0 %v5379_v53  ;;  %v4796_v61 = vpack.c.bf16 %v183_v58, %v181_v57  ;;  %v4798_v63 = vpack.c.bf16 %v188_v60, %v186_v59  ;;  %v185_v0 = vld [vmem:[%s7043_s1 + $0x20] sm:$0xff]  ;;  %v187_v1 = vld [vmem:[%s7043_s1 + $0x30] sm:$0xf]  ;;  %v3985_v4 = vld [vmem:[%s7043_s1 + $0x88] sm:$0xff] }
  0x24   :  { %4815 = vmatpush3.bf16.msra.mxu1 %v5501_v10  ;;  %4795 = vmatprep.subr.bf16.mxu0 %v4794_v56  ;;  %v4801_v7 = vpack.c.bf16 %v187_v1, %v185_v0  ;;  %v3984_v19 = vld [vmem:[%s7043_s1 + $0x80] sm:$0xff]  ;;  %v3986_v20 = vld [vmem:[%s7043_s1 + $0x90] sm:$0xff]  ;;  %v3989_v22 = vld [vmem:[%s7043_s1 + $0xa8] sm:$0xff] }
  0x25   :  { %4529 = vmatprep.subr.mxu1 %v5512_v11  ;;  %v3991_v23 = vld [vmem:[%s7043_s1 + $0xb8] sm:$0xf]  ;;  %v4818_v25 = vpack.c.bf16 %v3986_v20, %v3984_v19  ;;  %v3988_v27 = vld [vmem:[%s7043_s1 + $0xa0] sm:$0xff]  ;;  %v3990_v28 = vld [vmem:[%s7043_s1 + $0xb0] sm:$0xf] }
  0x26   :  { %v4820_v26 = vpack.c.bf16 %v3991_v23, %v3989_v22  ;;  %v4013_v30 = vld [vmem:[%s7043_s1 + $0xc8] sm:$0xff]  ;;  %v4015_v32 = vld [vmem:[%s7043_s1 + $0xd8] sm:$0xff]  ;;  %v4823_v34 = vpack.c.bf16 %v3990_v28, %v3988_v27  ;;  %v4068_v31 = vld [vmem:[%s7046_s4 + $0xf0] sm:$0xff] }
  0x27   :  { %v4838_v35 = vpack.c.bf16 %v4015_v32, %v4013_v30  ;;  %v4041_v54 = vld [vmem:[%s7043_s1 + $0x108] sm:$0xff]  ;;  %v4043_v55 = vld [vmem:[%s7043_s1 + $0x118] sm:$0xff]  ;;  %v4082_v27 = vld [vmem:[%s7046_s4 + $0x160] sm:$0xff] }
  0x28   :  { %4530 = vmatpush3.msra.mxu1 %v5512_v11  ;;  %v4860_v58 = vpack.c.bf16 %v4043_v55, %v4041_v54  ;;  %v4047_v0 = vld [vmem:[%s7043_s1 + $0x138] sm:$0xf]  ;;  %v4079_v22 = vld [vmem:[%s7046_s4 + $0x148] sm:$0xff]  ;;  %v4084_v30 = vld [vmem:[%s7046_s4 + $0x170] sm:$0xff] }
  0x29   :  { %4532 = vmatmul.mubr.msk.f32.vlgmr.msra.gmra.mrb[6].mxu1 %vm67_vm0, %v3973_v36  ;;  %4827 = vmatprep.subr.bf16.mxu1 %v5477_v3  ;;  %v4077_v19 = vld [vmem:[%s7046_s4 + $0x138] sm:$0xff]  ;;  %v4083_v28 = vld [vmem:[%s7046_s4 + $0x168] sm:$0xff] }
  0x2a   :  { %4534 = vmatprep.mubr.msk.f32.mxu1 %vm67_vm0, %v3974_v37  ;;  %4829 = vmatpush3.bf16.msra.mxu1 %v5477_v3  ;;  %v4085_v32 = vld [vmem:[%s7046_s4 + $0x178] sm:$0xff] }
  0x2b   :  { %4831 = vmatprep.subr.bf16.mxu1 %v5482_v5 }
  0x2d   :  { %4535 = vmatmul.mubr.msk.f32.gmra.mrb[8].mxu1 %vm67_vm0, %v3975_v38 }
  0x2e   :  { %4537 = vmatprep.mubr.msk.f32.mxu1 %vm67_vm0, %v3976_v39  ;;  %4833 = vmatpush3.bf16.msra.mxu1 %v5482_v5 }
  0x2f   :  { %4835 = vmatprep.subr.bf16.mxu1 %v5501_v10 }
  0x31   :  { %4538 = vmatmul.mubr.msk.f32.gmra.mrb[10].mxu1 %vm67_vm0, %v3977_v40 }
  0x32   :  { %4837 = vmatpush3.bf16.msra.mxu1 %v5501_v10  ;;  %4554 = vmatprep.mubr.msk.f32.mxu1 %vm67_vm0, %v4000_v41 }
  0x33   :  { %4552 = vmatprep.subr.mxu1 %v5512_v11 }
  0x36   :  { %4553 = vmatpush3.msra.mxu1 %v5512_v11 }
  0x37   :  { %4555 = vmatmul.mubr.msk.f32.vlgmr.msra.gmra.mrb[12].mxu1 %vm67_vm0, %v4001_v42  ;;  %4849 = vmatprep.subr.bf16.mxu1 %v5477_v3  ;;  %v4012_v42 = vld [vmem:[%s7043_s1 + $0xc0] sm:$0xff] }
  0x38   :  { %4557 = vmatprep.mubr.msk.f32.mxu1 %vm67_vm0, %v4002_v43  ;;  %4851 = vmatpush3.bf16.msra.mxu1 %v5477_v3  ;;  %v4014_v43 = vld [vmem:[%s7043_s1 + $0xd0] sm:$0xff] }
  0x39   :  { %4853 = vmatprep.subr.bf16.mxu1 %v5482_v5 }
  0x3b   :  { %4558 = vmatmul.mubr.msk.f32.gmra.mrb[14].mxu1 %vm67_vm0, %v4003_v44 }
  0x3c   :  { %4560 = vmatprep.mubr.msk.f32.mxu1 %vm67_vm0, %v4004_v45  ;;  %4855 = vmatpush3.bf16.msra.mxu1 %v5482_v5  ;;  %v3987_v5 = vld [vmem:[%s7043_s1 + $0x98] sm:$0xff]  ;;  %v4017_v45 = vld [vmem:[%s7043_s1 + $0xe8] sm:$0xff] }
  0x3d   :  { %4857 = vmatprep.subr.bf16.mxu1 %v5501_v10  ;;  %v4816_v9 = vpack.c.bf16 %v3987_v5, %v3985_v4  ;;  %v4046_v4 = vld [vmem:[%s7043_s1 + $0x130] sm:$0xf] }
  0x3f   :  { %4561 = vmatmul.mubr.msk.f32.gmra.mrb[16].mxu1 %vm67_vm0, %v4005_v46  ;;  %v4019_v46 = vld [vmem:[%s7043_s1 + $0xf8] sm:$0xf] }
  0x40   :  { %4859 = vmatpush3.bf16.msra.mxu1 %v5501_v10  ;;  %4577 = vmatprep.mubr.msk.f32.mxu1 %vm67_vm0, %v4028_v47 }
  0x41   :  { %4575 = vmatprep.subr.mxu1 %v5512_v11 }
  0x44   :  { %4576 = vmatpush3.msra.mxu1 %v5512_v11 }
  0x45   :  { %4578 = vmatmul.mubr.msk.f32.vlgmr.msra.gmra.mrb[18].mxu1 %vm67_vm0, %v4029_v48  ;;  %v4840_v48 = vpack.c.bf16 %v4014_v43, %v4012_v42 }
  0x46   :  { %4580 = vmatprep.mubr.msk.f32.mxu1 %vm67_vm0, %v4030_v49  ;;  %v4842_v49 = vpack.c.bf16 %v4019_v46, %v4017_v45 }
  0x49   :  { %4581 = vmatmul.mubr.msk.f32.gmra.mrb[20].mxu1 %vm67_vm0, %v4031_v50  ;;  %v4016_v50 = vld [vmem:[%s7043_s1 + $0xe0] sm:$0xff] }
  0x4a   :  { %4583 = vmatprep.mubr.msk.f32.mxu1 %vm67_vm0, %v4032_v51  ;;  %v4018_v51 = vld [vmem:[%s7043_s1 + $0xf0] sm:$0xf] }
  0x4b   :  { %v4845_v57 = vpack.c.bf16 %v4018_v51, %v4016_v50 }
  0x4d   :  { %4584 = vmatmul.mubr.msk.f32.gmra.mrb[22].mxu1 %vm67_vm0, %v4033_v52  ;;  %vm3903_vm0 = vcmask 74752  }
  0x4e   :  { %1445 = vmatprep.mubr.f32.mxu1 %v5379_v53 }
  0xec   :  { %v4510_v62 = vpop.f32.mrb[0].mxu1  ;;  %v4487_v3 = vpop.f32.mrb[0].mxu0 }
  0xed   :  { %v280_v2 = vpop.f32.mrb[1].mxu1  ;;  %v152_v6 = vpop.f32.mrb[1].mxu0 }
  0xee   :  { %3958 = vmatmul.mubr.msk.f32.vlgmr.msra.gmra.mrb[6].mxu0 %vm318_vm4, %v280_v2 }
  0xef   :  { %414 = vmatprep.mubr.f32.mxu0 %v5379_v53  ;;  %4797 = vmatpush1.bf16.msra.mxu0 %v4796_v61  ;;  %v4040_v61 = vld [vmem:[%s7043_s1 + $0x100] sm:$0xff] }
  0xf0   :  { %v4513_v8 = vpop.f32.mrb[2].mxu1  ;;  %4800 = vmatprep.subr.msk.bf16.mxu0 %vm5578_vm3, %v4798_v63  ;;  %v4045_v63 = vld [vmem:[%s7043_s1 + $0x128] sm:$0xff] }
  0xf1   :  { %v290_v10 = vpop.f32.mrb[3].mxu1  ;;  %v4490_v11 = vpop.f32.mrb[2].mxu0  ;;  %v4864_v2 = vpack.c.bf16 %v4047_v0, %v4045_v63  ;;  %v1567_v63 = vld [vmem:[%s7046_s4 + $0x8] sm:$0xff]  ;;  %v4059_v0 = vld [vmem:[%s7045_s3 + $0x18] sm:$0xff] }
  0xf2   :  { %3959 = vmatmul.mubr.msk.f32.gmra.mrb[8].mxu0 %vm318_vm4, %v4510_v62  ;;  %v162_v12 = vpop.f32.mrb[3].mxu0  ;;  %v4042_v62 = vld [vmem:[%s7043_s1 + $0x110] sm:$0xff] }
  0xf3   :  { %420 = vmatprep.mubr.f32.mxu0 %v5379_v53  ;;  %4803 = vmatpush1.bf16.msk.msra.mxu0 %vm5578_vm3, %v4801_v7  ;;  %v4862_v1 = vpack.c.bf16 %v4042_v62, %v4040_v61  ;;  %v4069_v7 = vld [vmem:[%s7046_s4 + $0xf8] sm:$0xff]  ;;  %v1370_v61 = vld [vmem:[%s7045_s3 + $0x10] sm:$0xff]  ;;  %v1566_v62 = vld [vmem:[%s7046_s4] sm:$0xff] }
  0xf4   :  { %v4516_v13 = vpop.f32.mrb[4].mxu1  ;;  %4817 = vmatprep.subr.bf16.mxu0 %v4816_v9  ;;  %v4070_v9 = vld [vmem:[%s7046_s4 + $0x100] sm:$0xff] }
  0xf5   :  { %v300_v14 = vpop.f32.mrb[5].mxu1  ;;  %v4493_v15 = vpop.f32.mrb[4].mxu0 }
  0xf6   :  { %3960 = vmatmul.mubr.msk.f32.gmra.mrb[10].mxu0 %vm318_vm4, %v290_v10  ;;  %v172_v16 = vpop.f32.mrb[5].mxu0  ;;  %v4071_v10 = vld [vmem:[%s7046_s4 + $0x108] sm:$0xff] }
  0xf7   :  { %426 = vmatprep.mubr.f32.mxu0 %v5379_v53 }
  0xfa   :  { %3961 = vmatmul.mubr.msk.f32.gmra.mrb[12].mxu0 %vm318_vm4, %v4513_v8  ;;  %v4940_v8 = vpack.c.bf16 %v4069_v7, %v4068_v31  ;;  %v1570_v31 = vld [vmem:[%s7046_s4 + $0x20] sm:$0xff]  ;;  %v1571_v7 = vld [vmem:[%s7046_s4 + $0x28] sm:$0xff] }
  0xfb   :  { %432 = vmatprep.mubr.f32.mxu0 %v5379_v53 }
  0xfc   :  { %v5734_v17 = vpop.f32.mrb[6].mxu1 }
  0xfd   :  { %v661_v18 = vpop.f32.mrb[7].mxu1 }
  0xfe   :  { %3962 = vmatmul.mubr.msk.f32.gmra.mrb[14].mxu0 %vm318_vm4, %v300_v14 }
  0xff   :  { %438 = vmatprep.mubr.f32.mxu0 %v5379_v53 }
 0x100   :  { %v5744_v21 = vpop.f32.mrb[8].mxu1 }
 0x101   :  { %v671_v24 = vpop.f32.mrb[9].mxu1 }
 0x102   :  { %3963 = vmatmul.mubr.msk.f32.gmra.mrb[16].mxu0 %vm318_vm4, %v4516_v13  ;;  %v4073_v13 = vld [vmem:[%s7046_s4 + $0x118] sm:$0xff] }
 0x103   :  { %533 = vmatprep.mubr.f32.mxu0 %v5379_v53 }
 0x104   :  { %v5760_v29 = vpop.f32.mrb[10].mxu1 }
 0x105   :  { %v681_v33 = vpop.f32.mrb[11].mxu1 }
 0x106   :  { %3966 = vmatmul.mubr.msk.f32.vlgmr.msra.gmra.mrb[6].mxu0 %vm318_vm4, %v152_v6  ;;  %v5380_v6 = vmov 0.0|0.0  }
 0x107   :  { %539 = vmatprep.mubr.f32.mxu0 %v5379_v53  ;;  %4819 = vmatpush1.bf16.msra.mxu0 %v4818_v25  ;;  %v4081_v25 = vld [vmem:[%s7046_s4 + $0x158] sm:$0xff] }
 0x108   :  { %4822 = vmatprep.subr.msk.bf16.mxu0 %vm5578_vm3, %v4820_v26 }
 0x10a   :  { %3967 = vmatmul.mubr.msk.f32.gmra.mrb[8].mxu0 %vm318_vm4, %v4487_v3  ;;  %v5773_v36 = vpop.f32.mrb[12].mxu1  ;;  %v4044_v3 = vld [vmem:[%s7043_s1 + $0x120] sm:$0xff] }
 0x10b   :  { %545 = vmatprep.mubr.f32.mxu0 %v5379_v53  ;;  %4825 = vmatpush1.bf16.msk.msra.mxu0 %vm5578_vm3, %v4823_v34  ;;  %v927_v37 = vpop.f32.mrb[13].mxu1  ;;  %v4867_v5 = vpack.c.bf16 %v4046_v4, %v4044_v3  ;;  %v4086_v34 = vld [vmem:[%s7046_s4 + $0x180] sm:$0xff]  ;;  %v1569_v3 = vld [vmem:[%s7046_s4 + $0x18] sm:$0xff] }
 0x10c   :  { %4839 = vmatprep.subr.bf16.mxu0 %v4838_v35  ;;  %v4087_v35 = vld [vmem:[%s7046_s4 + $0x188] sm:$0xff]  ;;  %v4060_v4 = vld [vmem:[%s7045_s3 + $0x20] sm:$0xff] }
 0x10e   :  { %3968 = vmatmul.mubr.msk.f32.gmra.mrb[10].mxu0 %vm318_vm4, %v162_v12  ;;  %v5779_v38 = vpop.f32.mrb[14].mxu1  ;;  %v4072_v12 = vld [vmem:[%s7046_s4 + $0x110] sm:$0xff] }
 0x10f   :  { %551 = vmatprep.mubr.f32.mxu0 %v5379_v53  ;;  %v937_v39 = vpop.f32.mrb[15].mxu1  ;;  %v4946_v14 = vpack.c.bf16 %v4073_v13, %v4072_v12  ;;  %v1574_v13 = vld [vmem:[%s7046_s4 + $0x40] sm:$0xff] }
 0x112   :  { %3969 = vmatmul.mubr.msk.f32.gmra.mrb[12].mxu0 %vm318_vm4, %v4490_v11  ;;  %v5783_v40 = vpop.f32.mrb[16].mxu1  ;;  %v4943_v11 = vpack.c.bf16 %v4071_v10, %v4070_v9  ;;  %v4901_v9 = vpack.c.bf16 %v1571_v7, %v1570_v31  ;;  %v1572_v10 = vld [vmem:[%s7046_s4 + $0x30] sm:$0xff] }
 0x113   :  { %557 = vmatprep.mubr.f32.mxu0 %v5379_v53  ;;  %v947_v41 = vpop.f32.mrb[17].mxu1 }
 0x116   :  { %3970 = vmatmul.mubr.msk.f32.gmra.mrb[14].mxu0 %vm318_vm4, %v172_v16  ;;  %v4075_v16 = vld [vmem:[%s7046_s4 + $0x128] sm:$0xff] }
 0x117   :  { %563 = vmatprep.mubr.f32.mxu0 %v5379_v53 }
 0x118   :  { %v4579_v44 = vpop.f32.mrb[18].mxu1 }
 0x119   :  { %v1193_v47 = vpop.f32.mrb[19].mxu1 }
 0x11a   :  { %3971 = vmatmul.mubr.msk.f32.gmra.mrb[16].mxu0 %vm318_vm4, %v4493_v15  ;;  %v4074_v15 = vld [vmem:[%s7046_s4 + $0x120] sm:$0xff] }
 0x11b   :  { %787 = vmatprep.mubr.f32.mxu0 %v5379_v53 }
 0x11c   :  { %v4582_v52 = vpop.f32.mrb[20].mxu1 }
 0x11d   :  { %v1203_v56 = vpop.f32.mrb[21].mxu1 }
 0x11e   :  { %3994 = vmatmul.mubr.msk.f32.vlgmr.msra.gmra.mrb[6].mxu0 %vm318_vm4, %v661_v18  ;;  %v4076_v18 = vld [vmem:[%s7046_s4 + $0x130] sm:$0xff] }
 0x11f   :  { %793 = vmatprep.mubr.f32.mxu0 %v5379_v53  ;;  %4841 = vmatpush1.bf16.msra.mxu0 %v4840_v48  ;;  %v4952_v20 = vpack.c.bf16 %v4077_v19, %v4076_v18  ;;  %v1578_v19 = vld [vmem:[%s7046_s4 + $0x60] sm:$0xff] }
 0x120   :  { %4844 = vmatprep.subr.msk.bf16.mxu0 %vm5578_vm3, %v4842_v49  ;;  %v4585_v59 = vpop.f32.mrb[22].mxu1 }
 0x121   :  { %v1213_v60 = vpop.f32.mrb[23].mxu1 }
 0x122   :  { %3995 = vmatmul.mubr.msk.f32.gmra.mrb[8].mxu0 %vm318_vm4, %v5734_v17  ;;  %v4949_v17 = vpack.c.bf16 %v4075_v16, %v4074_v15  ;;  %v1576_v16 = vld [vmem:[%s7046_s4 + $0x50] sm:$0xff] }
 0x123   :  { %799 = vmatprep.mubr.f32.mxu0 %v5379_v53  ;;  %4847 = vmatpush1.bf16.msk.msra.mxu0 %vm5578_vm3, %v4845_v57 }
 0x124   :  { %4861 = vmatprep.subr.bf16.mxu0 %v4860_v58 }
 0x126   :  { %3996 = vmatmul.mubr.msk.f32.gmra.mrb[10].mxu0 %vm318_vm4, %v671_v24  ;;  %v4080_v24 = vld [vmem:[%s7046_s4 + $0x150] sm:$0xff] }
 0x127   :  { %805 = vmatprep.mubr.f32.mxu0 %v5379_v53  ;;  %v4958_v26 = vpack.c.bf16 %v4081_v25, %v4080_v24  ;;  %v1582_v25 = vld [vmem:[%s7046_s4 + $0x80] sm:$0xff] }
 0x12a   :  { %3997 = vmatmul.mubr.msk.f32.gmra.mrb[12].mxu0 %vm318_vm4, %v5744_v21  ;;  %v4078_v21 = vld [vmem:[%s7046_s4 + $0x140] sm:$0xff] }
 0x12b   :  { %811 = vmatprep.mubr.f32.mxu0 %v5379_v53  ;;  %v4955_v23 = vpack.c.bf16 %v4079_v22, %v4078_v21  ;;  %v1580_v22 = vld [vmem:[%s7046_s4 + $0x70] sm:$0xff] }
 0x12e   :  { %3998 = vmatmul.mubr.msk.f32.gmra.mrb[14].mxu0 %vm318_vm4, %v681_v33  ;;  %v4964_v33 = vpack.c.bf16 %v4085_v32, %v4084_v30  ;;  %v1586_v32 = vld [vmem:[%s7046_s4 + $0xa0] sm:$0xff] }
 0x12f   :  { %817 = vmatprep.mubr.f32.mxu0 %v5379_v53 }
 0x132   :  { %3999 = vmatmul.mubr.msk.f32.gmra.mrb[16].mxu0 %vm318_vm4, %v5760_v29  ;;  %v4961_v29 = vpack.c.bf16 %v4083_v28, %v4082_v27  ;;  %v1584_v28 = vld [vmem:[%s7046_s4 + $0x90] sm:$0xff] }
 0x133   :  { %1053 = vmatprep.mubr.f32.mxu0 %v5379_v53 }
 0x136   :  { %4022 = vmatmul.mubr.msk.f32.vlgmr.msra.gmra.mrb[6].mxu0 %vm318_vm4, %v927_v37  ;;  %v4088_v37 = vld [vmem:[%s7046_s4 + $0x190] sm:$0xff] }
 0x137   :  { %1059 = vmatprep.mubr.f32.mxu0 %v5379_v53  ;;  %4863 = vmatpush1.bf16.msra.mxu0 %v4862_v1  ;;  %v4895_v1 = vpack.c.bf16 %v1567_v63, %v1566_v62 }
 0x138   :  { %4866 = vmatprep.subr.msk.bf16.mxu0 %vm5578_vm3, %v4864_v2  ;;  %v1568_v2 = vld [vmem:[%s7046_s4 + $0x10] sm:$0xff] }
 0x13a   :  { %4023 = vmatmul.mubr.msk.f32.gmra.mrb[8].mxu0 %vm318_vm4, %v5773_v36  ;;  %v4967_v36 = vpack.c.bf16 %v4087_v35, %v4086_v34  ;;  %v1588_v35 = vld [vmem:[%s7046_s4 + $0xb0] sm:$0xff] }
 0x13b   :  { %1065 = vmatprep.mubr.f32.mxu0 %v5379_v53  ;;  %4869 = vmatpush1.bf16.msk.msra.mxu0 %vm5578_vm3, %v4867_v5  ;;  %v4898_v5 = vpack.c.bf16 %v1569_v3, %v1568_v2 }
 0x13c   :  { %4939 = vmatprep.subr.bf16.mxu0 %v5380_v6 }
 0x13e   :  { %4024 = vmatmul.mubr.msk.f32.gmra.mrb[10].mxu0 %vm318_vm4, %v937_v39 }
 0x13f   :  { %1071 = vmatprep.mubr.f32.mxu0 %v5379_v53 }
 0x142   :  { %4025 = vmatmul.mubr.msk.f32.gmra.mrb[12].mxu0 %vm318_vm4, %v5779_v38  ;;  %v4089_v38 = vld [vmem:[%s7046_s4 + $0x198] sm:$0xff] }
 0x143   :  { %1077 = vmatprep.mubr.f32.mxu0 %v5379_v53  ;;  %v4970_v39 = vpack.c.bf16 %v4089_v38, %v4088_v37  ;;  %v4090_v37 = vld [vmem:[%s7046_s4 + $0x1a0] sm:$0xff] }
 0x146   :  { %4026 = vmatmul.mubr.msk.f32.gmra.mrb[14].mxu0 %vm318_vm4, %v947_v41 }
 0x147   :  { %1083 = vmatprep.mubr.f32.mxu0 %v5379_v53 }
 0x14a   :  { %4027 = vmatmul.mubr.msk.f32.gmra.mrb[16].mxu0 %vm318_vm4, %v5783_v40 }
 0x14b   :  { %1319 = vmatprep.mubr.f32.mxu0 %v5379_v53 }
 0x14e   :  { %4050 = vmatmul.mubr.msk.f32.vlgmr.msra.gmra.mrb[6].mxu0 %vm318_vm4, %v1193_v47 }
 0x14f   :  { %1325 = vmatprep.mubr.f32.mxu0 %v5379_v53  ;;  %4941 = vmatpush1.bf16.msra.mxu0 %v4940_v8  ;;  %v4061_v8 = vld [vmem:[%s7045_s3 + $0x28] sm:$0xff] }
 0x150   :  { %4942 = vmatprep.subr.bf16.mxu0 %v5380_v6 }
 0x152   :  { %4051 = vmatmul.mubr.msk.f32.gmra.mrb[8].mxu0 %vm318_vm4, %v4579_v44 }
 0x153   :  { %1331 = vmatprep.mubr.f32.mxu0 %v5379_v53  ;;  %4944 = vmatpush1.bf16.msra.mxu0 %v4943_v11  ;;  %v1573_v11 = vld [vmem:[%s7046_s4 + $0x38] sm:$0xff] }
 0x154   :  { %4945 = vmatprep.subr.bf16.mxu0 %v5380_v6  ;;  %v4904_v12 = vpack.c.bf16 %v1573_v11, %v1572_v10 }
 0x156   :  { %4052 = vmatmul.mubr.msk.f32.gmra.mrb[10].mxu0 %vm318_vm4, %v1203_v56 }
 0x157   :  { %1337 = vmatprep.mubr.f32.mxu0 %v5379_v53  ;;  %4947 = vmatpush1.bf16.msra.mxu0 %v4946_v14  ;;  %v1575_v14 = vld [vmem:[%s7046_s4 + $0x48] sm:$0xff] }
 0x158   :  { %4948 = vmatprep.subr.bf16.mxu0 %v5380_v6  ;;  %v4907_v15 = vpack.c.bf16 %v1575_v14, %v1574_v13  ;;  %v1813_v14 = vld [vmem:[%s7049_s7] sm:$0xff] }
 0x15a   :  { %4053 = vmatmul.mubr.msk.f32.gmra.mrb[12].mxu0 %vm318_vm4, %v4582_v52 }
 0x15b   :  { %1343 = vmatprep.mubr.f32.mxu0 %v5379_v53  ;;  %4950 = vmatpush1.bf16.msra.mxu0 %v4949_v17  ;;  %v1577_v17 = vld [vmem:[%s7046_s4 + $0x58] sm:$0xff] }
 0x15c   :  { %4951 = vmatprep.subr.bf16.mxu0 %v5380_v6  ;;  %v4910_v18 = vpack.c.bf16 %v1577_v17, %v1576_v16 }
 0x15e   :  { %4054 = vmatmul.mubr.msk.f32.gmra.mrb[14].mxu0 %vm318_vm4, %v1213_v60  ;;  %v1369_v60 = vld [vmem:[%s7045_s3 + $0x8] sm:$0xff] }
 0x15f   :  { %1349 = vmatprep.mubr.f32.mxu0 %v5379_v53  ;;  %4953 = vmatpush1.bf16.msra.mxu0 %v4952_v20  ;;  %v1579_v20 = vld [vmem:[%s7046_s4 + $0x68] sm:$0xff] }
 0x160   :  { %4954 = vmatprep.subr.bf16.mxu0 %v5380_v6  ;;  %v4913_v21 = vpack.c.bf16 %v1579_v20, %v1578_v19 }
 0x162   :  { %4055 = vmatmul.mubr.msk.f32.gmra.mrb[16].mxu0 %vm318_vm4, %v4585_v59  ;;  %v1368_v59 = vld [vmem:[%s7045_s3] sm:$0xff] }
 0x163   :  { %4956 = vmatpush1.bf16.msra.mxu0 %v4955_v23  ;;  %v1581_v23 = vld [vmem:[%s7046_s4 + $0x78] sm:$0xff] }
 0x164   :  { %4957 = vmatprep.subr.bf16.mxu0 %v5380_v6  ;;  %v4916_v24 = vpack.c.bf16 %v1581_v23, %v1580_v22 }
 0x167   :  { %4959 = vmatpush1.bf16.msra.mxu0 %v4958_v26  ;;  %v1583_v26 = vld [vmem:[%s7046_s4 + $0x88] sm:$0xff] }
 0x168   :  { %4960 = vmatprep.subr.bf16.mxu0 %v5380_v6  ;;  %v4919_v27 = vpack.c.bf16 %v1583_v26, %v1582_v25 }
 0x16b   :  { %4962 = vmatpush1.bf16.msra.mxu0 %v4961_v29  ;;  %v1585_v29 = vld [vmem:[%s7046_s4 + $0x98] sm:$0xff] }
 0x16c   :  { %4963 = vmatprep.subr.bf16.mxu0 %v5380_v6  ;;  %v4922_v30 = vpack.c.bf16 %v1585_v29, %v1584_v28 }
 0x16f   :  { %4965 = vmatpush1.bf16.msra.mxu0 %v4964_v33  ;;  %v1587_v33 = vld [vmem:[%s7046_s4 + $0xa8] sm:$0xff] }
 0x170   :  { %4966 = vmatprep.subr.bf16.mxu0 %v5380_v6  ;;  %v4925_v34 = vpack.c.bf16 %v1587_v33, %v1586_v32 }
 0x173   :  { %4968 = vmatpush1.bf16.msra.mxu0 %v4967_v36  ;;  %v1589_v36 = vld [vmem:[%s7046_s4 + $0xb8] sm:$0xff] }
 0x174   :  { %4969 = vmatprep.subr.bf16.mxu0 %v5380_v6  ;;  %v4928_v38 = vpack.c.bf16 %v1589_v36, %v1588_v35 }
 0x177   :  { %4971 = vmatpush1.bf16.msra.mxu0 %v4970_v39  ;;  %v4091_v39 = vld [vmem:[%s7046_s4 + $0x1a8] sm:$0xff] }
 0x178   :  { %4972 = vmatprep.subr.bf16.mxu0 %v5380_v6 }
 0x221   :  { %v1321_v40 = vpop.f32.mrb[6].mxu0 }
 0x222   :  { %v1323_v41 = vpop.f32.mrb[7].mxu0 }
 0x225   :  { %v1327_v42 = vpop.f32.mrb[8].mxu0 }
 0x226   :  { %v4872_v43 = vpack.c.bf16 %v1327_v42, %v1321_v40  ;;  %v1329_v44 = vpop.f32.mrb[9].mxu0  ;;  %v4973_v40 = vpack.c.bf16 %v4091_v39, %v4090_v37  ;;  %v1591_v42 = vld [vmem:[%s7046_s4 + $0xc8] sm:$0xff] }
 0x227   :  { %v4870_v45 = vpack.c.bf16 %v1329_v44, %v1323_v41  ;;  %v1590_v41 = vld [vmem:[%s7046_s4 + $0xc0] sm:$0xff] }
 0x228   :  { %4974 = vmatpush1.bf16.msra.mxu0 %v4973_v40  ;;  %v4931_v44 = vpack.c.bf16 %v1591_v42, %v1590_v41  ;;  %v1814_v40 = vld [vmem:[%s7049_s7 + $0x8] sm:$0xff]  ;;  %v4104_v42 = vld [vmem:[%s7049_s7 + $0x10] sm:$0xff] }
 0x229   :  { %v1333_v46 = vpop.f32.mrb[10].mxu0  ;;  %4871 = vmatprep.subr.bf16.mxu1 %v4870_v45  ;;  %4975 = vmatprep.subr.bf16.mxu0 %v5380_v6  ;;  %v4143_v41 = vld [vmem:[%s7049_s7 + $0x28] sm:$0xff] }
 0x22a   :  { %v1335_v47 = vpop.f32.mrb[11].mxu0  ;;  %4873 = vmatpush1.bf16.msra.mxu1 %v4872_v43 }
 0x22d   :  { %v1339_v48 = vpop.f32.mrb[12].mxu0 }
 0x22e   :  { %v4876_v49 = vpack.c.bf16 %v1339_v48, %v1333_v46  ;;  %v1341_v50 = vpop.f32.mrb[13].mxu0  ;;  %v1593_v48 = vld [vmem:[%s7046_s4 + $0xd8] sm:$0xff] }
 0x22f   :  { %v4874_v51 = vpack.c.bf16 %v1341_v50, %v1335_v47  ;;  %v1592_v47 = vld [vmem:[%s7046_s4 + $0xd0] sm:$0xff] }
 0x230   :  { %v4934_v50 = vpack.c.bf16 %v1593_v48, %v1592_v47  ;;  %v4110_v47 = vld [vmem:[%s7048_s6 + $0x100] sm:$0xff]  ;;  %v4105_v48 = vld [vmem:[%s7049_s7 + $0x18] sm:$0xff] }
 0x231   :  { %v1345_v52 = vpop.f32.mrb[14].mxu0  ;;  %4875 = vmatprep.subr.bf16.mxu1 %v4874_v51 }
 0x232   :  { %v1347_v54 = vpop.f32.mrb[15].mxu0  ;;  %4877 = vmatpush1.bf16.msra.mxu1 %v4876_v49 }
 0x235   :  { %v1351_v55 = vpop.f32.mrb[16].mxu0 }
 0x236   :  { %v4880_v56 = vpack.c.bf16 %v1351_v55, %v1345_v52  ;;  %v1353_v57 = vpop.f32.mrb[17].mxu0  ;;  %v1595_v55 = vld [vmem:[%s7046_s4 + $0xe8] sm:$0xff] }
 0x237   :  { %v4878_v58 = vpack.c.bf16 %v1353_v57, %v1347_v54  ;;  %v1594_v54 = vld [vmem:[%s7046_s4 + $0xe0] sm:$0xff] }
 0x238   :  { %v4937_v57 = vpack.c.bf16 %v1595_v55, %v1594_v54  ;;  %v4214_v54 = vld [vmem:[%s7049_s7 + $0x40] sm:$0xff] }
 0x239   :  { %4879 = vmatprep.subr.bf16.mxu1 %v4878_v58 }
 0x23a   :  { %4881 = vmatpush1.bf16.msra.mxu1 %v4880_v56 }
 0x23b   :  { %4883 = vmatprep.subr.bf16.mxu1 %v4870_v45  ;;  %v4093_v45 = vld [vmem:[%s7046_s4 + $0x1b8] sm:$0xff] }
 0x23d   :  { %4056 = vmatmul.mubr.msk.f32.vlgmr.msra.gmra.mrb[24].mxu1 %vm1371_vm5, %v1368_v59 }
 0x23e   :  { %4885 = vmatpush1.bf16.msra.mxu1 %v4872_v43  ;;  %1451 = vmatprep.mubr.f32.mxu1 %v5379_v53  ;;  %v4092_v43 = vld [vmem:[%s7046_s4 + $0x1b0] sm:$0xff] }
 0x23f   :  { %4887 = vmatprep.subr.bf16.mxu1 %v4874_v51  ;;  %v4976_v46 = vpack.c.bf16 %v4093_v45, %v4092_v43  ;;  %v4095_v51 = vld [vmem:[%s7046_s4 + $0x1c8] sm:$0xff]  ;;  %v4178_v43 = vld [vmem:[%s7049_s7 + $0x30] sm:$0xff] }
 0x240   :  { %v4111_v45 = vld [vmem:[%s7048_s6 + $0x108] sm:$0xff] }
 0x241   :  { %4057 = vmatmul.mubr.msk.f32.gmra.mrb[26].mxu1 %vm1371_vm5, %v1369_v60  ;;  %4977 = vmatpush1.bf16.msra.mxu0 %v4976_v46  ;;  %v4108_v46 = vld [vmem:[%s7048_s6 + $0xf0] sm:$0xff] }
 0x242   :  { %4889 = vmatpush1.bf16.msra.mxu1 %v4876_v49  ;;  %1457 = vmatprep.mubr.f32.mxu1 %v5379_v53  ;;  %v4094_v49 = vld [vmem:[%s7046_s4 + $0x1c0] sm:$0xff]  ;;  %v4994_v55 = vpack.c.bf16 %v4110_v47, %v4108_v46  ;;  %v1906_v47 = vld [vmem:[%s7048_s6 + $0x48] sm:$0xff] }
 0x243   :  { %4891 = vmatprep.subr.bf16.mxu1 %v4878_v58  ;;  %4978 = vmatprep.subr.bf16.mxu0 %v5380_v6  ;;  %v4979_v52 = vpack.c.bf16 %v4095_v51, %v4094_v49  ;;  %v4097_v58 = vld [vmem:[%s7046_s4 + $0x1d8] sm:$0xff]  ;;  %v4115_v51 = vld [vmem:[%s7048_s6 + $0x128] sm:$0xff] }
 0x245   :  { %4058 = vmatmul.mubr.msk.f32.gmra.mrb[28].mxu1 %vm1371_vm5, %v1370_v61  ;;  %4980 = vmatpush1.bf16.msra.mxu0 %v4979_v52  ;;  %v4179_v52 = vld [vmem:[%s7049_s7 + $0x38] sm:$0xff] }
 0x246   :  { %4893 = vmatpush1.bf16.msra.mxu1 %v4880_v56  ;;  %1541 = vmatprep.mubr.f32.mxu1 %v5379_v53  ;;  %v4096_v56 = vld [vmem:[%s7046_s4 + $0x1d0] sm:$0xff] }
 0x247   :  { %4894 = vmatprep.subr.bf16.mxu1 %v5380_v6  ;;  %4981 = vmatprep.subr.bf16.mxu0 %v5380_v6  ;;  %v4982_v59 = vpack.c.bf16 %v4097_v58, %v4096_v56  ;;  %v4114_v58 = vld [vmem:[%s7048_s6 + $0x120] sm:$0xff] }
 0x249   :  { %4062 = vmatmul.mubr.msk.f32.vlgmr.msra.gmra.mrb[30].mxu1 %vm1371_vm5, %v4059_v0  ;;  %4983 = vmatpush1.bf16.msra.mxu0 %v4982_v59  ;;  %v4117_v59 = vld [vmem:[%s7048_s6 + $0x138] sm:$0xff] }
 0x24a   :  { %1547 = vmatprep.mubr.f32.mxu1 %v5379_v53  ;;  %4896 = vmatpush1.bf16.msra.mxu1 %v4895_v1 }
 0x24b   :  { %4897 = vmatprep.subr.bf16.mxu1 %v5380_v6 }
 0x24d   :  { %4063 = vmatmul.mubr.msk.f32.gmra.mrb[32].mxu1 %vm1371_vm5, %v4060_v4 }
 0x24e   :  { %1553 = vmatprep.mubr.f32.mxu1 %v5379_v53  ;;  %4899 = vmatpush1.bf16.msra.mxu1 %v4898_v5 }
 0x24f   :  { %4900 = vmatprep.subr.bf16.mxu1 %v5380_v6 }
 0x251   :  { %4064 = vmatmul.mubr.msk.f32.gmra.mrb[34].mxu1 %vm1371_vm5, %v4061_v8 }
 0x252   :  { %4902 = vmatpush1.bf16.msra.mxu1 %v4901_v9 }
 0x253   :  { %4903 = vmatprep.subr.bf16.mxu1 %v5380_v6 }
 0x256   :  { %4905 = vmatpush1.bf16.msra.mxu1 %v4904_v12 }
 0x257   :  { %4906 = vmatprep.subr.bf16.mxu1 %v5380_v6 }
 0x25a   :  { %4908 = vmatpush1.bf16.msra.mxu1 %v4907_v15  ;;  %v4142_v15 = vld [vmem:[%s7049_s7 + $0x20] sm:$0xff] }
 0x25b   :  { %4909 = vmatprep.subr.bf16.mxu1 %v5380_v6 }
 0x25e   :  { %4911 = vmatpush1.bf16.msra.mxu1 %v4910_v18 }
 0x25f   :  { %4912 = vmatprep.subr.bf16.mxu1 %v5380_v6 }
 0x262   :  { %4914 = vmatpush1.bf16.msra.mxu1 %v4913_v21  ;;  %v4101_v21 = vld [vmem:[%s7047_s5] ss:$0 sm:$0xff] }
 0x263   :  { %4915 = vmatprep.subr.bf16.mxu1 %v5380_v6 }
 0x266   :  { %4917 = vmatpush1.bf16.msra.mxu1 %v4916_v24 }
 0x267   :  { %4918 = vmatprep.subr.bf16.mxu1 %v5380_v6 }
 0x26a   :  { %4920 = vmatpush1.bf16.msra.mxu1 %v4919_v27 }
 0x26b   :  { %4921 = vmatprep.subr.bf16.mxu1 %v5380_v6 }
 0x26e   :  { %4923 = vmatpush1.bf16.msra.mxu1 %v4922_v30 }
 0x26f   :  { %4924 = vmatprep.subr.bf16.mxu1 %v5380_v6 }
 0x272   :  { %4926 = vmatpush1.bf16.msra.mxu1 %v4925_v34 }
 0x273   :  { %4927 = vmatprep.subr.bf16.mxu1 %v5380_v6 }
 0x276   :  { %4929 = vmatpush1.bf16.msra.mxu1 %v4928_v38 }
 0x277   :  { %4930 = vmatprep.subr.bf16.mxu1 %v5380_v6 }
 0x27a   :  { %4932 = vmatpush1.bf16.msra.mxu1 %v4931_v44  ;;  %v4109_v44 = vld [vmem:[%s7048_s6 + $0xf8] sm:$0xff] }
 0x27b   :  { %4933 = vmatprep.subr.bf16.mxu1 %v5380_v6  ;;  %v4992_v49 = vpack.c.bf16 %v4111_v45, %v4109_v44  ;;  %v1901_v44 = vld [vmem:[%s7048_s6 + $0x20] sm:$0xff]  ;;  %v1903_v45 = vld [vmem:[%s7048_s6 + $0x30] sm:$0xff] }
 0x27e   :  { %4935 = vmatpush1.bf16.msra.mxu1 %v4934_v50  ;;  %v4113_v50 = vld [vmem:[%s7048_s6 + $0x118] sm:$0xff] }
 0x27f   :  { %4936 = vmatprep.subr.bf16.mxu1 %v5380_v6  ;;  %v4996_v56 = vpack.c.bf16 %v4115_v51, %v4113_v50  ;;  %v5026_v51 = vpack.c.bf16 %v1903_v45, %v1901_v44 }
 0x282   :  { %4938 = vmatpush1.bf16.msra.mxu1 %v4937_v57  ;;  %v4112_v57 = vld [vmem:[%s7048_s6 + $0x110] sm:$0xff] }
 0x310   :  { %v1447_v60 = vpop.f32.mrb[24].mxu1 }
 0x311   :  { %v1449_v61 = vpop.f32.mrb[25].mxu1 }
 0x314   :  { %v1453_v62 = vpop.f32.mrb[26].mxu1 }
 0x315   :  { %v1455_v63 = vpop.f32.mrb[27].mxu1 }
 0x318   :  { %v1459_v0 = vpop.f32.mrb[28].mxu1 }
 0x319   :  { %v1461_v1 = vpop.f32.mrb[29].mxu1 }
 0x31c   :  { %v1543_v2 = vpop.f32.mrb[30].mxu1 }
 0x31d   :  { %v1560_v3 = vmax.f32 %v1447_v60, %v1543_v2  ;;  %v1545_v4 = vpop.f32.mrb[31].mxu1  ;;  %v4119_v60 = vld [vmem:[%s7048_s6 + $0x148] sm:$0xff]  ;;  %v4121_v2 = vld [vmem:[%s7048_s6 + $0x158] sm:$0xff] }
 0x31e   :  { %v1561_v5 = vmax.f32 %v1449_v61, %v1545_v4  ;;  %v4998_v61 = vpack.c.bf16 %v4114_v58, %v4112_v57  ;;  %v1912_v57 = vld [vmem:[%s7048_s6 + $0x78] sm:$0xff] }
 0x320   :  { %v1549_v31 = vpop.f32.mrb[32].mxu1  ;;  %4065 = vmatprep.mubr.msk.f32.mxu1 %vm1596_vm6, %v1561_v5  ;;  %4098 = vmatprep.mubr.msk.f32.mxu0 %vm1596_vm6, %v1561_v5 }
 0x321   :  { %v1562_v7 = vmax.f32 %v1453_v62, %v1549_v31  ;;  %v1551_v8 = vpop.f32.mrb[33].mxu1  ;;  %1671 = vmatmul.mubr.f32.vlgmr.msra.gmra.mrb[36].mxu1 %v1560_v3  ;;  %1782 = vmatmul.mubr.f32.vlgmr.msra.gmra.mrb[18].mxu0 %v1560_v3  ;;  %v4215_v62 = vld [vmem:[%s7049_s7 + $0x48] sm:$0xff]  ;;  %v4120_v31 = vld [vmem:[%s7048_s6 + $0x150] sm:$0xff] }
 0x322   :  { %v1563_v9 = vmax.f32 %v1455_v63, %v1551_v8  ;;  %v5000_v63 = vpack.c.bf16 %v4119_v60, %v4117_v59  ;;  %v4123_v3 = vld [vmem:[%s7048_s6 + $0x168] sm:$0xff]  ;;  %v4125_v8 = vld [vmem:[%s7048_s6 + $0x178] sm:$0xff] }
 0x323   :  { %v5004_v5 = vpack.c.bf16 %v4123_v3, %v4121_v2 }
 0x324   :  { %v1555_v10 = vpop.f32.mrb[34].mxu1  ;;  %4066 = vmatprep.mubr.msk.f32.mxu1 %vm1596_vm6, %v1563_v9  ;;  %4099 = vmatprep.mubr.msk.f32.mxu0 %vm1596_vm6, %v1563_v9  ;;  %v4127_v9 = vld [vmem:[%s7048_s6 + $0x188] sm:$0xff] }
 0x325   :  { %v1564_v11 = vmax.f32 %v1459_v0, %v1555_v10  ;;  %v1557_v12 = vpop.f32.mrb[35].mxu1  ;;  %1676 = vmatmul.mubr.f32.gmra.mrb[38].mxu1 %v1562_v7  ;;  %1787 = vmatmul.mubr.f32.gmra.mrb[20].mxu0 %v1562_v7  ;;  %v4116_v0 = vld [vmem:[%s7048_s6 + $0x130] sm:$0xff]  ;;  %v4122_v7 = vld [vmem:[%s7048_s6 + $0x160] sm:$0xff] }
 0x326   :  { %v1565_v13 = vmax.f32 %v1461_v1, %v1557_v12  ;;  %v4118_v1 = vld [vmem:[%s7048_s6 + $0x140] sm:$0xff]  ;;  %v5006_v10 = vpack.c.bf16 %v4122_v7, %v4120_v31  ;;  %v4124_v12 = vld [vmem:[%s7048_s6 + $0x170] sm:$0xff]  ;;  %v1918_v31 = vld [vmem:[%s7048_s6 + $0xa8] sm:$0xff] }
 0x327   :  { %v5002_v4 = vpack.c.bf16 %v4118_v1, %v4116_v0  ;;  %v1914_v0 = vld [vmem:[%s7048_s6 + $0x88] sm:$0xff]  ;;  %v1916_v1 = vld [vmem:[%s7048_s6 + $0x98] sm:$0xff] }
 0x328   :  { %4067 = vmatprep.mubr.msk.f32.mxu1 %vm1596_vm6, %v1565_v13  ;;  %4100 = vmatprep.mubr.msk.f32.mxu0 %vm1596_vm6, %v1565_v13  ;;  %v4126_v13 = vld [vmem:[%s7048_s6 + $0x180] sm:$0xff]  ;;  %v5036_v3 = vpack.c.bf16 %v1916_v1, %v1914_v0  ;;  %v1920_v7 = vld [vmem:[%s7048_s6 + $0xb8] sm:$0xff]  ;;  %v4171_v0 = vld [vmem:[%s7048_s6 + $0x2a8] sm:$0xff] }
 0x329   :  { %1681 = vmatmul.mubr.f32.gmra.mrb[40].mxu1 %v1564_v11  ;;  %1792 = vmatmul.mubr.f32.gmra.mrb[22].mxu0 %v1564_v11  ;;  %v5008_v11 = vpack.c.bf16 %v4127_v9, %v4125_v8  ;;  %v5040_v9 = vpack.c.bf16 %v1920_v7, %v1918_v31  ;;  %v4173_v1 = vld [vmem:[%s7048_s6 + $0x2b8] sm:$0xff]  ;;  %v4175_v7 = vld [vmem:[%s7048_s6 + $0x2c8] sm:$0xff] }
 0x32a   :  { %4592 = vmatprep.mubr.msk.f32.mxu1 %vm1815_vm7, %v1813_v14  ;;  %4610 = vmatprep.mubr.msk.f32.mxu0 %vm1815_vm7, %v4142_v15  ;;  %v4129_v14 = vld [vmem:[%s7048_s6 + $0x198] sm:$0xff]  ;;  %v4131_v15 = vld [vmem:[%s7048_s6 + $0x1a8] sm:$0xff] }
 0x3f4   :  { %v1672_v16 = vpop.f32.mrb[36].mxu1  ;;  %v1783_v17 = vpop.f32.mrb[18].mxu0 }
 0x3f5   :  { %v1797_v18 = vmax.f32 %v1672_v16, %v1783_v17  ;;  %v1674_v19 = vpop.f32.mrb[37].mxu1  ;;  %v1785_v20 = vpop.f32.mrb[19].mxu0  ;;  %v5010_v16 = vpack.c.bf16 %v4126_v13, %v4124_v12  ;;  %v5012_v17 = vpack.c.bf16 %v4131_v15, %v4129_v14  ;;  %v1922_v12 = vld [vmem:[%s7048_s6 + $0xc8] sm:$0xff]  ;;  %v1924_v13 = vld [vmem:[%s7048_s6 + $0xd8] sm:$0xff] }
 0x3f6   :  { %v4130_v19 = vld [vmem:[%s7048_s6 + $0x1a0] sm:$0xff]  ;;  %v4133_v20 = vld [vmem:[%s7048_s6 + $0x1b8] sm:$0xff]  ;;  %v5044_v15 = vpack.c.bf16 %v1924_v13, %v1922_v12  ;;  %v4189_v13 = vld [vmem:[%s7048_s6 + $0x308] sm:$0xff] }
 0x3f7   :  { %v1807_v24 = vadd.f32 %v4101_v21, %v1797_v18  ;;  %v4128_v18 = vld [vmem:[%s7048_s6 + $0x190] sm:$0xff]  ;;  %v4187_v12 = vld [vmem:[%s7048_s6 + $0x2f8] sm:$0xff] }
 0x3f8   :  { %v1677_v22 = vpop.f32.mrb[38].mxu1  ;;  %v1788_v23 = vpop.f32.mrb[20].mxu0 }
 0x3f9   :  { %v1798_v25 = vmax.f32 %v1677_v22, %v1788_v23  ;;  %v1679_v26 = vpop.f32.mrb[39].mxu1  ;;  %v1790_v27 = vpop.f32.mrb[21].mxu0  ;;  %v1810_v32 = vmax.f32 %v1807_v24, 0.0  ;;  %v5014_v22 = vpack.c.bf16 %v4130_v19, %v4128_v18  ;;  %v4132_v24 = vld [vmem:[%s7048_s6 + $0x1b0] sm:$0xff]  ;;  %v1926_v19 = vld [vmem:[%s7048_s6 + $0xe8] sm:$0xff] }
 0x3fa   :  { %v4137_v27 = vld [vmem:[%s7048_s6 + $0x1d8] sm:$0xff] }
 0x3fb   :  { %v1808_v28 = vadd.f32 %v4101_v21, %v1798_v25  ;;  %v4134_v25 = vld [vmem:[%s7048_s6 + $0x1c0] sm:$0xff] }
 0x3fc   :  { %v1682_v29 = vpop.f32.mrb[40].mxu1  ;;  %v1793_v30 = vpop.f32.mrb[22].mxu0  ;;  %v5018_v26 = vpack.c.bf16 %v4134_v25, %v4132_v24  ;;  %v4151_v24 = vld [vmem:[%s7048_s6 + $0x208] sm:$0xff]  ;;  %v4153_v25 = vld [vmem:[%s7048_s6 + $0x218] sm:$0xff] }
 0x3fd   :  { %v1811_v33 = vmax.f32 %v1808_v28, 0.0  ;;  %v1799_v34 = vmax.f32 %v1682_v29, %v1793_v30  ;;  %v1684_v35 = vpop.f32.mrb[41].mxu1  ;;  %v1795_v36 = vpop.f32.mrb[23].mxu0  ;;  %v1898_v28 = vld [vmem:[%s7048_s6 + $0x8] sm:$0xff]  ;;  %v1900_v29 = vld [vmem:[%s7048_s6 + $0x18] sm:$0xff]  ;;  %v4136_v30 = vld [vmem:[%s7048_s6 + $0x1d0] sm:$0xff] }
 0x3ff   :  { %v4984_v37 = vpack.c.bf16 %v1811_v33, %v1810_v32  ;;  %v1809_v38 = vadd.f32 %v4101_v21, %v1799_v34  ;;  %v4135_v21 = vld [vmem:[%s7048_s6 + $0x1c8] sm:$0xff]  ;;  %v5020_v32 = vpack.c.bf16 %v1900_v29, %v1898_v28  ;;  %v5056_v29 = vpack.c.bf16 %v4153_v25, %v4151_v24  ;;  %v4190_v24 = vld [vmem:[%s7048_s6 + $0x310] sm:$0xff]  ;;  %v4192_v25 = vld [vmem:[%s7048_s6 + $0x320] sm:$0xff] }
 0x400   :  { %v5016_v23 = vpack.c.bf16 %v4135_v21, %v4133_v20  ;;  %v4147_v20 = vld [vmem:[%s7048_s6 + $0x1e8] sm:$0xff]  ;;  %v4149_v21 = vld [vmem:[%s7048_s6 + $0x1f8] sm:$0xff] }
 0x401   :  { %v1812_v39 = vmax.f32 %v1809_v38, 0.0  ;;  %4985 = vmatprep.subr.bf16.mxu1 %v4984_v37  ;;  %5049 = vmatprep.subr.bf16.mxu0 %v4984_v37  ;;  %v1899_v38 = vld [vmem:[%s7048_s6 + $0x10] sm:$0xff] }
 0x402   :  { %4987 = vmatpush3.bf16.msra.mxu1 %v4984_v37  ;;  %5051 = vmatpush3.bf16.msra.mxu0 %v4984_v37 }
 0x403   :  { %4590 = vmatprep.subr.mxu1 %v1812_v39  ;;  %4608 = vmatprep.subr.mxu0 %v1812_v39 }
 0x406   :  { %4591 = vmatpush3.msra.mxu1 %v1812_v39  ;;  %4609 = vmatpush3.msra.mxu0 %v1812_v39 }
 0x407   :  { %4989 = vmatprep.subr.bf16.mxu1 %v4984_v37  ;;  %5081 = vmatprep.subr.bf16.mxu0 %v4984_v37 }
 0x408   :  { %4593 = vmatmul.mubr.msk.f32.vlgmr.msra.gmra.mrb[42].mxu1 %vm1815_vm7, %v1814_v40  ;;  %4611 = vmatmul.mubr.msk.f32.vlgmr.msra.gmra.mrb[24].mxu0 %vm1815_vm7, %v4143_v41  ;;  %v1904_v40 = vld [vmem:[%s7048_s6 + $0x38] sm:$0xff] }
 0x409   :  { %4991 = vmatpush3.bf16.msra.mxu1 %v4984_v37  ;;  %5083 = vmatpush3.bf16.msra.mxu0 %v4984_v37 }
 0x40a   :  { %4599 = vmatprep.subr.mxu1 %v1812_v39  ;;  %4617 = vmatprep.subr.mxu0 %v1812_v39 }
 0x40b   :  { %4601 = vmatprep.mubr.msk.f32.mxu1 %vm1815_vm7, %v4104_v42  ;;  %4619 = vmatprep.mubr.msk.f32.mxu0 %vm1815_vm7, %v4178_v43 }
 0x40d   :  { %4600 = vmatpush3.msra.mxu1 %v1812_v39  ;;  %4618 = vmatpush3.msra.mxu0 %v1812_v39 }
 0x40e   :  { %4602 = vmatmul.mubr.msk.f32.vlgmr.msra.gmra.mrb[44].mxu1 %vm1815_vm7, %v4105_v48  ;;  %5113 = vmatprep.subr.bf16.mxu0 %v4984_v37  ;;  %v1908_v48 = vld [vmem:[%s7048_s6 + $0x58] sm:$0xff] }
 0x40f   :  { %4620 = vmatmul.mubr.msk.f32.vlgmr.msra.gmra.mrb[26].mxu0 %vm1815_vm7, %v4179_v52  ;;  %4993 = vmatprep.subr.bf16.mxu1 %v4992_v49  ;;  %v5028_v52 = vpack.c.bf16 %v1908_v48, %v1906_v47  ;;  %v4160_v47 = vld [vmem:[%s7048_s6 + $0x250] sm:$0xff]  ;;  %v4163_v48 = vld [vmem:[%s7048_s6 + $0x268] sm:$0xff] }
 0x410   :  { %5115 = vmatpush3.bf16.msra.mxu0 %v4984_v37  ;;  %4628 = vmatprep.mubr.msk.f32.mxu0 %vm1815_vm7, %v4214_v54  ;;  %v1897_v37 = vld [vmem:[%s7048_s6] sm:$0xff] }
 0x411   :  { %4626 = vmatprep.subr.mxu0 %v1812_v39  ;;  %4995 = vmatpush1.bf16.msra.mxu1 %v4994_v55  ;;  %v5022_v41 = vpack.c.bf16 %v1899_v38, %v1897_v37  ;;  %v1905_v54 = vld [vmem:[%s7048_s6 + $0x40] sm:$0xff]  ;;  %v1907_v55 = vld [vmem:[%s7048_s6 + $0x50] sm:$0xff]  ;;  %v4155_v37 = vld [vmem:[%s7048_s6 + $0x228] sm:$0xff] }
 0x412   :  { %4997 = vmatprep.subr.bf16.mxu1 %v4996_v56  ;;  %2113 = vmatprep.mubr.f32.mxu1 %v5379_v53  ;;  %v1910_v56 = vld [vmem:[%s7048_s6 + $0x68] sm:$0xff]  ;;  %v5030_v58 = vpack.c.bf16 %v1907_v55, %v1905_v54  ;;  %v4157_v38 = vld [vmem:[%s7048_s6 + $0x238] sm:$0xff]  ;;  %v4162_v54 = vld [vmem:[%s7048_s6 + $0x260] sm:$0xff] }
 0x413   :  { %v5032_v60 = vpack.c.bf16 %v1912_v57, %v1910_v56  ;;  %v4164_v55 = vld [vmem:[%s7048_s6 + $0x270] sm:$0xff]  ;;  %v4167_v56 = vld [vmem:[%s7048_s6 + $0x288] sm:$0xff]  ;;  %v4169_v57 = vld [vmem:[%s7048_s6 + $0x298] sm:$0xff] }
 0x414   :  { %4627 = vmatpush3.msra.mxu0 %v1812_v39  ;;  %v1902_v39 = vld [vmem:[%s7048_s6 + $0x28] sm:$0xff] }
 0x415   :  { %4629 = vmatmul.mubr.msk.f32.vlgmr.msra.gmra.mrb[28].mxu0 %vm1815_vm7, %v4215_v62  ;;  %4999 = vmatpush1.bf16.msra.mxu1 %v4998_v61  ;;  %v5024_v43 = vpack.c.bf16 %v1904_v40, %v1902_v39  ;;  %v1909_v61 = vld [vmem:[%s7048_s6 + $0x60] sm:$0xff]  ;;  %v1911_v62 = vld [vmem:[%s7048_s6 + $0x70] sm:$0xff]  ;;  %v5060_v40 = vpack.c.bf16 %v4157_v38, %v4155_v37 }
 0x416   :  { %5001 = vmatprep.subr.bf16.mxu1 %v5000_v63  ;;  %2884 = vmatprep.mubr.f32.mxu0 %v5379_v53  ;;  %v5034_v2 = vpack.c.bf16 %v1911_v62, %v1909_v61  ;;  %v4166_v61 = vld [vmem:[%s7048_s6 + $0x280] sm:$0xff]  ;;  %v4168_v62 = vld [vmem:[%s7048_s6 + $0x290] sm:$0xff] }
 0x419   :  { %5003 = vmatpush1.bf16.msra.mxu1 %v5002_v4  ;;  %v1913_v4 = vld [vmem:[%s7048_s6 + $0x80] sm:$0xff] }
 0x41a   :  { %5005 = vmatprep.subr.bf16.mxu1 %v5004_v5  ;;  %v1915_v5 = vld [vmem:[%s7048_s6 + $0x90] sm:$0xff] }
 0x41b   :  { %v5038_v8 = vpack.c.bf16 %v1915_v5, %v1913_v4  ;;  %v4170_v4 = vld [vmem:[%s7048_s6 + $0x2a0] sm:$0xff]  ;;  %v4172_v5 = vld [vmem:[%s7048_s6 + $0x2b0] sm:$0xff] }
 0x41c   :  { %v5078_v31 = vpack.c.bf16 %v4172_v5, %v4170_v4  ;;  %v4222_v4 = vld [vmem:[%s7048_s6 + $0x3e0] sm:$0xff]  ;;  %v4224_v5 = vld [vmem:[%s7048_s6 + $0x3f0] sm:$0xff] }
 0x41d   :  { %5007 = vmatpush1.bf16.msra.mxu1 %v5006_v10  ;;  %v1917_v10 = vld [vmem:[%s7048_s6 + $0xa0] sm:$0xff] }
 0x41e   :  { %5009 = vmatprep.subr.bf16.mxu1 %v5008_v11  ;;  %v1919_v11 = vld [vmem:[%s7048_s6 + $0xb0] sm:$0xff] }
 0x41f   :  { %v5042_v14 = vpack.c.bf16 %v1919_v11, %v1917_v10  ;;  %v4182_v10 = vld [vmem:[%s7048_s6 + $0x2d0] sm:$0xff]  ;;  %v4184_v11 = vld [vmem:[%s7048_s6 + $0x2e0] sm:$0xff] }
 0x421   :  { %5011 = vmatpush1.bf16.msra.mxu1 %v5010_v16  ;;  %v1921_v16 = vld [vmem:[%s7048_s6 + $0xc0] sm:$0xff] }
 0x422   :  { %5013 = vmatprep.subr.bf16.mxu1 %v5012_v17  ;;  %v1923_v17 = vld [vmem:[%s7048_s6 + $0xd0] sm:$0xff] }
 0x423   :  { %v5046_v18 = vpack.c.bf16 %v1923_v17, %v1921_v16  ;;  %v5086_v16 = vpack.c.bf16 %v4184_v11, %v4182_v10  ;;  %v5088_v17 = vpack.c.bf16 %v4189_v13, %v4187_v12  ;;  %v4226_v10 = vld [vmem:[%s7048_s6 + $0x400] sm:$0xff]  ;;  %v4228_v11 = vld [vmem:[%s7048_s6 + $0x410] sm:$0xff]  ;;  %v4231_v12 = vld [vmem:[%s7048_s6 + $0x428] sm:$0xff] }
 0x424   :  { %v5126_v13 = vpack.c.bf16 %v4228_v11, %v4226_v10  ;;  %v2986_v10 = vld [vmem:[%s7051_s9 + $0x88] sm:$0xff] }
 0x425   :  { %5015 = vmatpush1.bf16.msra.mxu1 %v5014_v22  ;;  %v4146_v22 = vld [vmem:[%s7048_s6 + $0x1e0] sm:$0xff] }
 0x426   :  { %5017 = vmatprep.subr.bf16.mxu1 %v5016_v23  ;;  %v4148_v23 = vld [vmem:[%s7048_s6 + $0x1f0] sm:$0xff] }
 0x427   :  { %v5054_v28 = vpack.c.bf16 %v4148_v23, %v4146_v22 }
 0x429   :  { %5019 = vmatpush1.bf16.msra.mxu1 %v5018_v26  ;;  %v1925_v26 = vld [vmem:[%s7048_s6 + $0xe0] sm:$0xff] }
 0x42a   :  { %2077 = vmatprep.subr.mxu1 %v4137_v27  ;;  %v5052_v27 = vpack.c.bf16 %v4149_v21, %v4147_v20  ;;  %v4191_v20 = vld [vmem:[%s7048_s6 + $0x318] sm:$0xff]  ;;  %v4193_v21 = vld [vmem:[%s7048_s6 + $0x328] sm:$0xff] }
 0x42b   :  { %v5092_v23 = vpack.c.bf16 %v4193_v21, %v4191_v20  ;;  %v4234_v20 = vld [vmem:[%s7048_s6 + $0x440] sm:$0xff]  ;;  %v4236_v21 = vld [vmem:[%s7048_s6 + $0x450] sm:$0xff] }
 0x42d   :  { %2078 = vmatpush1.msra.mxu1 %v4136_v30  ;;  %v4150_v30 = vld [vmem:[%s7048_s6 + $0x200] sm:$0xff] }
 0x42e   :  { %5021 = vmatprep.subr.bf16.mxu1 %v5020_v32  ;;  %v4152_v32 = vld [vmem:[%s7048_s6 + $0x210] sm:$0xff] }
 0x42f   :  { %v5058_v39 = vpack.c.bf16 %v4152_v32, %v4150_v30  ;;  %v4196_v30 = vld [vmem:[%s7048_s6 + $0x340] sm:$0xff]  ;;  %v4199_v32 = vld [vmem:[%s7048_s6 + $0x358] sm:$0xff] }
 0x4db   :  { %v6267_v33 = vpop.f32.mrb[42].mxu1  ;;  %v6269_v34 = vpop.f32.mrb[24].mxu0 }
 0x4dc   :  { %v6271_v35 = vpop.f32.mrb[43].mxu1  ;;  %v6273_v36 = vpop.f32.mrb[25].mxu0 }
 0x4e1   :  { %v4603_v42 = vpop.f32.mrb[44].mxu1 }
 0x4e2   :  { %v2002_v46 = vpop.f32.mrb[45].mxu1  ;;  %v6299_v49 = vpop.f32.mrb[26].mxu0 }
 0x4e3   :  { %4138 = vmatmul.mubr.msk.f32.vlgmr.msra.gmra.mrb[46].mxu1 %vm2042_vm8, %v2002_v46  ;;  %v6302_v50 = vpop.f32.mrb[27].mxu0  ;;  %v4158_v46 = vld [vmem:[%s7048_s6 + $0x240] sm:$0xff] }
 0x4e4   :  { %5023 = vmatpush1.bf16.msra.mxu1 %v5022_v41  ;;  %2119 = vmatprep.mubr.f32.mxu1 %v5379_v53  ;;  %v4154_v41 = vld [vmem:[%s7048_s6 + $0x220] sm:$0xff] }
 0x4e5   :  { %5025 = vmatprep.subr.bf16.mxu1 %v5024_v43  ;;  %v4159_v43 = vld [vmem:[%s7048_s6 + $0x248] sm:$0xff] }
 0x4e7   :  { %4139 = vmatmul.mubr.msk.f32.gmra.mrb[48].mxu1 %vm2042_vm8, %v4603_v42  ;;  %v4156_v42 = vld [vmem:[%s7048_s6 + $0x230] sm:$0xff] }
 0x4e8   :  { %5027 = vmatpush1.bf16.msra.mxu1 %v5026_v51  ;;  %2196 = vmatprep.mubr.f32.mxu1 %v5379_v53  ;;  %v6319_v59 = vpop.f32.mrb[28].mxu0  ;;  %v5062_v44 = vpack.c.bf16 %v4156_v42, %v4154_v41  ;;  %v5066_v51 = vpack.c.bf16 %v4160_v47, %v4158_v46  ;;  %v4203_v41 = vld [vmem:[%s7048_s6 + $0x378] sm:$0xff]  ;;  %v4205_v42 = vld [vmem:[%s7048_s6 + $0x388] sm:$0xff] }
 0x4e9   :  { %5029 = vmatprep.subr.bf16.mxu1 %v5028_v52  ;;  %v6327_v63 = vpop.f32.mrb[29].mxu0  ;;  %v4207_v46 = vld [vmem:[%s7048_s6 + $0x398] sm:$0xff]  ;;  %v4209_v47 = vld [vmem:[%s7048_s6 + $0x3a8] sm:$0xff] }
 0x4ec   :  { %5031 = vmatpush1.bf16.msra.mxu1 %v5030_v58  ;;  %v5070_v58 = vpack.c.bf16 %v4164_v55, %v4162_v54  ;;  %v4211_v55 = vld [vmem:[%s7048_s6 + $0x3b8] sm:$0xff] }
 0x4ed   :  { %5033 = vmatprep.subr.bf16.mxu1 %v5032_v60  ;;  %v5072_v60 = vpack.c.bf16 %v4169_v57, %v4167_v56  ;;  %v4219_v56 = vld [vmem:[%s7048_s6 + $0x3c8] sm:$0xff]  ;;  %v4221_v57 = vld [vmem:[%s7048_s6 + $0x3d8] sm:$0xff] }
 0x4f0   :  { %5035 = vmatpush1.bf16.msra.mxu1 %v5034_v2  ;;  %v5074_v2 = vpack.c.bf16 %v4168_v62, %v4166_v61  ;;  %v4223_v61 = vld [vmem:[%s7048_s6 + $0x3e8] sm:$0xff]  ;;  %v4225_v62 = vld [vmem:[%s7048_s6 + $0x3f8] sm:$0xff] }
 0x4f1   :  { %5037 = vmatprep.subr.bf16.mxu1 %v5036_v3  ;;  %v5076_v3 = vpack.c.bf16 %v4173_v1, %v4171_v0  ;;  %v4210_v0 = vld [vmem:[%s7048_s6 + $0x3b0] sm:$0xff]  ;;  %v5116_v1 = vpack.c.bf16 %v4221_v57, %v4219_v56  ;;  %v2976_v57 = vld [vmem:[%s7051_s9 + $0x38] sm:$0xff] }
 0x4f2   :  { %v2975_v56 = vld [vmem:[%s7051_s9 + $0x30] sm:$0xff] }
 0x4f4   :  { %5039 = vmatpush1.bf16.msra.mxu1 %v5038_v8  ;;  %v4183_v8 = vld [vmem:[%s7048_s6 + $0x2d8] sm:$0xff] }
 0x4f5   :  { %5041 = vmatprep.subr.bf16.mxu1 %v5040_v9  ;;  %v4185_v9 = vld [vmem:[%s7048_s6 + $0x2e8] sm:$0xff] }
 0x4f8   :  { %5043 = vmatpush1.bf16.msra.mxu1 %v5042_v14  ;;  %v4174_v14 = vld [vmem:[%s7048_s6 + $0x2c0] sm:$0xff] }
 0x4f9   :  { %5045 = vmatprep.subr.bf16.mxu1 %v5044_v15  ;;  %v5084_v15 = vpack.c.bf16 %v4185_v9, %v4183_v8  ;;  %v5122_v8 = vpack.c.bf16 %v4224_v5, %v4222_v4  ;;  %v2982_v4 = vld [vmem:[%s7051_s9 + $0x68] sm:$0xff] }
 0x4fc   :  { %5047 = vmatpush1.bf16.msra.mxu1 %v5046_v18  ;;  %v4186_v18 = vld [vmem:[%s7048_s6 + $0x2f0] sm:$0xff] }
 0x4fd   :  { %2160 = vmatprep.subr.mxu1 %v1926_v19  ;;  %v4188_v19 = vld [vmem:[%s7048_s6 + $0x300] sm:$0xff] }
 0x4fe   :  { %v5090_v22 = vpack.c.bf16 %v4188_v19, %v4186_v18 }
 0x500   :  { %2161 = vmatpush1.msra.mxu1 %v1925_v26  ;;  %v4195_v26 = vld [vmem:[%s7048_s6 + $0x338] sm:$0xff] }
 0x501   :  { %4140 = vmatmul.mubr.msk.f32.vlgmr.msra.gmra.mrb[46].mxu1 %vm2042_vm8, %v6271_v35  ;;  %5053 = vmatprep.subr.bf16.mxu1 %v5052_v27  ;;  %v4161_v35 = vld [vmem:[%s7048_s6 + $0x258] sm:$0xff]  ;;  %v5094_v27 = vpack.c.bf16 %v4192_v25, %v4190_v24  ;;  %v5134_v24 = vpack.c.bf16 %v4236_v21, %v4234_v20 }
 0x502   :  { %5055 = vmatpush1.bf16.msra.mxu1 %v5054_v28  ;;  %2202 = vmatprep.mubr.f32.mxu1 %v5379_v53  ;;  %v5064_v45 = vpack.c.bf16 %v4161_v35, %v4159_v43  ;;  %v5104_v35 = vpack.c.bf16 %v4205_v42, %v4203_v41 }
 0x503   :  { %5057 = vmatprep.subr.bf16.mxu1 %v5056_v29  ;;  %v4194_v29 = vld [vmem:[%s7048_s6 + $0x330] sm:$0xff] }
 0x504   :  { %v5098_v37 = vpack.c.bf16 %v4196_v30, %v4194_v29 }
 0x505   :  { %4141 = vmatmul.mubr.msk.f32.gmra.mrb[48].mxu1 %vm2042_vm8, %v6267_v33  ;;  %v4165_v33 = vld [vmem:[%s7048_s6 + $0x278] sm:$0xff] }
 0x506   :  { %5059 = vmatpush1.bf16.msra.mxu1 %v5058_v39  ;;  %2394 = vmatprep.mubr.f32.mxu1 %v5379_v53  ;;  %v5068_v52 = vpack.c.bf16 %v4165_v33, %v4163_v48  ;;  %v4198_v39 = vld [vmem:[%s7048_s6 + $0x350] sm:$0xff]  ;;  %v5108_v33 = vpack.c.bf16 %v4209_v47, %v4207_v46  ;;  %v4251_v46 = vld [vmem:[%s7050_s8 + $0x8] sm:$0xff] }
 0x507   :  { %5061 = vmatprep.subr.bf16.mxu1 %v5060_v40  ;;  %v4200_v40 = vld [vmem:[%s7048_s6 + $0x360] sm:$0xff] }
 0x508   :  { %v5102_v43 = vpack.c.bf16 %v4200_v40, %v4198_v39  ;;  %v4246_v39 = vld [vmem:[%s7048_s6 + $0x4a0] sm:$0xff] }
 0x50a   :  { %5063 = vmatpush1.bf16.msra.mxu1 %v5062_v44  ;;  %v4202_v44 = vld [vmem:[%s7048_s6 + $0x370] sm:$0xff] }
 0x50b   :  { %5065 = vmatprep.subr.bf16.mxu1 %v5064_v45  ;;  %v4204_v45 = vld [vmem:[%s7048_s6 + $0x380] sm:$0xff] }
 0x50c   :  { %v5106_v48 = vpack.c.bf16 %v4204_v45, %v4202_v44  ;;  %v2815_v45 = vld [vmem:[%s7050_s8] sm:$0xff] }
 0x50e   :  { %5067 = vmatpush1.bf16.msra.mxu1 %v5066_v51  ;;  %v4206_v51 = vld [vmem:[%s7048_s6 + $0x390] sm:$0xff] }
 0x50f   :  { %5069 = vmatprep.subr.bf16.mxu1 %v5068_v52  ;;  %v4208_v52 = vld [vmem:[%s7048_s6 + $0x3a0] sm:$0xff] }
 0x510   :  { %v5110_v54 = vpack.c.bf16 %v4208_v52, %v4206_v51  ;;  %v2973_v52 = vld [vmem:[%s7051_s9 + $0x20] sm:$0xff] }
 0x512   :  { %5071 = vmatpush1.bf16.msra.mxu1 %v5070_v58  ;;  %v4218_v58 = vld [vmem:[%s7048_s6 + $0x3c0] sm:$0xff] }
 0x513   :  { %5073 = vmatprep.subr.bf16.mxu1 %v5072_v60  ;;  %v4220_v60 = vld [vmem:[%s7048_s6 + $0x3d0] sm:$0xff] }
 0x516   :  { %5075 = vmatpush1.bf16.msra.mxu1 %v5074_v2  ;;  %v5118_v2 = vpack.c.bf16 %v4220_v60, %v4218_v58  ;;  %v5162_v58 = vpack.c.bf16 %v2976_v57, %v2975_v56  ;;  %v2977_v60 = vld [vmem:[%s7051_s9 + $0x40] sm:$0xff] }
 0x517   :  { %5077 = vmatprep.subr.bf16.mxu1 %v5076_v3  ;;  %v5120_v3 = vpack.c.bf16 %v4225_v62, %v4223_v61  ;;  %v2978_v61 = vld [vmem:[%s7051_s9 + $0x48] sm:$0xff]  ;;  %v3243_v57 = vld [vmem:[%s7053_s11 + $0x20] sm:$0xff] }
 0x518   :  { %v5165_v62 = vpack.c.bf16 %v2978_v61, %v2977_v60  ;;  %v3245_v61 = vld [vmem:[%s7053_s11 + $0x30] sm:$0xff] }
 0x51a   :  { %5079 = vmatpush1.bf16.msra.mxu1 %v5078_v31  ;;  %v4227_v31 = vld [vmem:[%s7048_s6 + $0x408] sm:$0xff] }
 0x51b   :  { %2358 = vmatprep.subr.mxu1 %v4175_v7  ;;  %v4229_v7 = vld [vmem:[%s7048_s6 + $0x418] sm:$0xff] }
 0x51c   :  { %v5124_v9 = vpack.c.bf16 %v4229_v7, %v4227_v31  ;;  %v2983_v31 = vld [vmem:[%s7051_s9 + $0x70] sm:$0xff]  ;;  %v2984_v7 = vld [vmem:[%s7051_s9 + $0x78] sm:$0xff] }
 0x51e   :  { %2359 = vmatpush1.msra.mxu1 %v4174_v14 }
 0x51f   :  { %4176 = vmatmul.mubr.msk.f32.vlgmr.msra.gmra.mrb[46].mxu1 %vm2042_vm8, %v6273_v36  ;;  %5085 = vmatprep.subr.bf16.mxu1 %v5084_v15  ;;  %v4197_v36 = vld [vmem:[%s7048_s6 + $0x348] sm:$0xff]  ;;  %v4230_v15 = vld [vmem:[%s7048_s6 + $0x420] sm:$0xff] }
 0x520   :  { %5087 = vmatpush1.bf16.msra.mxu1 %v5086_v16  ;;  %2400 = vmatprep.mubr.f32.mxu1 %v5379_v53  ;;  %v5096_v28 = vpack.c.bf16 %v4197_v36, %v4195_v26  ;;  %v4232_v16 = vld [vmem:[%s7048_s6 + $0x430] sm:$0xff]  ;;  %v4238_v26 = vld [vmem:[%s7048_s6 + $0x460] sm:$0xff] }
 0x521   :  { %5089 = vmatprep.subr.bf16.mxu1 %v5088_v17  ;;  %v4235_v17 = vld [vmem:[%s7048_s6 + $0x448] sm:$0xff]  ;;  %v5130_v18 = vpack.c.bf16 %v4232_v16, %v4230_v15  ;;  %v4240_v36 = vld [vmem:[%s7048_s6 + $0x470] sm:$0xff]  ;;  %v4254_v16 = vld [vmem:[%s7051_s9 + $0xa0] sm:$0xff] }
 0x522   :  { %v5138_v29 = vpack.c.bf16 %v4240_v36, %v4238_v26  ;;  %v4259_v26 = vld [vmem:[%s7051_s9 + $0xc8] sm:$0xff] }
 0x523   :  { %4177 = vmatmul.mubr.msk.f32.gmra.mrb[48].mxu1 %vm2042_vm8, %v6269_v34  ;;  %v4201_v34 = vld [vmem:[%s7048_s6 + $0x368] sm:$0xff] }
 0x524   :  { %5091 = vmatpush1.bf16.msra.mxu1 %v5090_v22  ;;  %2596 = vmatprep.mubr.f32.mxu1 %v5379_v53  ;;  %v5100_v38 = vpack.c.bf16 %v4201_v34, %v4199_v32  ;;  %v4239_v22 = vld [vmem:[%s7048_s6 + $0x468] sm:$0xff]  ;;  %v4242_v32 = vld [vmem:[%s7048_s6 + $0x480] sm:$0xff]  ;;  %v4244_v34 = vld [vmem:[%s7048_s6 + $0x490] sm:$0xff] }
 0x525   :  { %5093 = vmatprep.subr.bf16.mxu1 %v5092_v23  ;;  %v4241_v23 = vld [vmem:[%s7048_s6 + $0x478] sm:$0xff] }
 0x526   :  { %v5136_v25 = vpack.c.bf16 %v4241_v23, %v4239_v22  ;;  %v4256_v22 = vld [vmem:[%s7051_s9 + $0xb0] sm:$0xff]  ;;  %v4257_v23 = vld [vmem:[%s7051_s9 + $0xb8] sm:$0xff] }
 0x528   :  { %5095 = vmatpush1.bf16.msra.mxu1 %v5094_v27  ;;  %v4243_v27 = vld [vmem:[%s7048_s6 + $0x488] sm:$0xff] }
 0x529   :  { %5097 = vmatprep.subr.bf16.mxu1 %v5096_v28  ;;  %v4245_v28 = vld [vmem:[%s7048_s6 + $0x498] sm:$0xff] }
 0x52a   :  { %v5140_v30 = vpack.c.bf16 %v4245_v28, %v4243_v27  ;;  %v4260_v27 = vld [vmem:[%s7051_s9 + $0xd0] sm:$0xff]  ;;  %v4261_v28 = vld [vmem:[%s7051_s9 + $0xd8] sm:$0xff] }
 0x52c   :  { %5099 = vmatpush1.bf16.msra.mxu1 %v5098_v37  ;;  %v5142_v37 = vpack.c.bf16 %v4244_v34, %v4242_v32  ;;  %v4263_v32 = vld [vmem:[%s7051_s9 + $0xe8] sm:$0xff] }
 0x52d   :  { %5101 = vmatprep.subr.bf16.mxu1 %v5100_v38  ;;  %v4247_v38 = vld [vmem:[%s7048_s6 + $0x4a8] sm:$0xff] }
 0x530   :  { %5103 = vmatpush1.bf16.msra.mxu1 %v5102_v43 }
 0x531   :  { %5105 = vmatprep.subr.bf16.mxu1 %v5104_v35 }
 0x534   :  { %5107 = vmatpush1.bf16.msra.mxu1 %v5106_v48  ;;  %v2971_v48 = vld [vmem:[%s7051_s9 + $0x10] sm:$0xff] }
 0x535   :  { %5109 = vmatprep.subr.bf16.mxu1 %v5108_v33  ;;  %v2972_v33 = vld [vmem:[%s7051_s9 + $0x18] sm:$0xff] }
 0x536   :  { %v5156_v51 = vpack.c.bf16 %v2972_v33, %v2971_v48  ;;  %v3239_v33 = vld [vmem:[%s7053_s11] sm:$0xff] }
 0x538   :  { %5111 = vmatpush1.bf16.msra.mxu1 %v5110_v54  ;;  %v2974_v54 = vld [vmem:[%s7051_s9 + $0x28] sm:$0xff] }
 0x539   :  { %2560 = vmatprep.subr.mxu1 %v4211_v55  ;;  %v5159_v55 = vpack.c.bf16 %v2974_v54, %v2973_v52  ;;  %v3241_v52 = vld [vmem:[%s7053_s11 + $0x10] sm:$0xff] }
 0x53c   :  { %2561 = vmatpush1.msra.mxu1 %v4210_v0  ;;  %v2979_v0 = vld [vmem:[%s7051_s9 + $0x50] sm:$0xff] }
 0x53d   :  { %4212 = vmatmul.mubr.msk.f32.vlgmr.msra.gmra.mrb[46].mxu1 %vm2042_vm8, %v6302_v50  ;;  %5117 = vmatprep.subr.bf16.mxu1 %v5116_v1  ;;  %v4233_v50 = vld [vmem:[%s7048_s6 + $0x438] sm:$0xff] }
 0x53e   :  { %5119 = vmatpush1.bf16.msra.mxu1 %v5118_v2  ;;  %2602 = vmatprep.mubr.f32.mxu1 %v5379_v53  ;;  %v5128_v14 = vpack.c.bf16 %v4233_v50, %v4231_v12  ;;  %v2980_v1 = vld [vmem:[%s7051_s9 + $0x58] sm:$0xff]  ;;  %v2987_v12 = vld [vmem:[%s7051_s9 + $0x90] sm:$0xff] }
 0x53f   :  { %5121 = vmatprep.subr.bf16.mxu1 %v5120_v3  ;;  %v5168_v2 = vpack.c.bf16 %v2980_v1, %v2979_v0  ;;  %v2981_v3 = vld [vmem:[%s7051_s9 + $0x60] sm:$0xff]  ;;  %v2988_v50 = vld [vmem:[%s7051_s9 + $0x98] sm:$0xff] }
 0x540   :  { %v5171_v5 = vpack.c.bf16 %v2982_v4, %v2981_v3  ;;  %v3247_v1 = vld [vmem:[%s7053_s11 + $0x40] sm:$0xff] }
 0x541   :  { %4213 = vmatmul.mubr.msk.f32.gmra.mrb[48].mxu1 %vm2042_vm8, %v6299_v49  ;;  %v4237_v49 = vld [vmem:[%s7048_s6 + $0x458] sm:$0xff] }
 0x542   :  { %5123 = vmatpush1.bf16.msra.mxu1 %v5122_v8  ;;  %2798 = vmatprep.mubr.f32.mxu1 %v5379_v53  ;;  %v5132_v19 = vpack.c.bf16 %v4237_v49, %v4235_v17  ;;  %v5174_v8 = vpack.c.bf16 %v2984_v7, %v2983_v31  ;;  %v4255_v17 = vld [vmem:[%s7051_s9 + $0xa8] sm:$0xff]  ;;  %v4275_v7 = vld [vmem:[%s7052_s10] ss:$0 sm:$0xff] }
 0x543   :  { %5125 = vmatprep.subr.bf16.mxu1 %v5124_v9  ;;  %v2985_v9 = vld [vmem:[%s7051_s9 + $0x80] sm:$0xff]  ;;  %v5183_v21 = vpack.c.bf16 %v4255_v17, %v4254_v16  ;;  %v4282_v17 = vld [vmem:[%s7053_s11 + $0x68] sm:$0xff] }
 0x544   :  { %v5177_v11 = vpack.c.bf16 %v2986_v10, %v2985_v9  ;;  %v4281_v16 = vld [vmem:[%s7053_s11 + $0x60] sm:$0xff] }
 0x546   :  { %5127 = vmatpush1.bf16.msra.mxu1 %v5126_v13  ;;  %v5180_v13 = vpack.c.bf16 %v2988_v50, %v2987_v12  ;;  %v3164_v12 = vld [vmem:[%s7054_s12] sm:$0x3]  ;;  %v4279_v50 = vld [vmem:[%s7053_s11 + $0x50] sm:$0xff] }
 0x547   :  { %5129 = vmatprep.subr.bf16.mxu1 %v5128_v14 }
 0x54a   :  { %5131 = vmatpush1.bf16.msra.mxu1 %v5130_v18 }
 0x54b   :  { %5133 = vmatprep.subr.bf16.mxu1 %v5132_v19 }
 0x54e   :  { %5135 = vmatpush1.bf16.msra.mxu1 %v5134_v24  ;;  %v5186_v24 = vpack.c.bf16 %v4257_v23, %v4256_v22  ;;  %v4286_v22 = vld [vmem:[%s7053_s11 + $0x88] sm:$0xff] }
 0x54f   :  { %5137 = vmatprep.subr.bf16.mxu1 %v5136_v25  ;;  %v4258_v25 = vld [vmem:[%s7051_s9 + $0xc0] sm:$0xff] }
 0x550   :  { %v5189_v36 = vpack.c.bf16 %v4259_v26, %v4258_v25  ;;  %v4288_v25 = vld [vmem:[%s7053_s11 + $0x98] sm:$0xff] }
 0x552   :  { %5139 = vmatpush1.bf16.msra.mxu1 %v5138_v29  ;;  %v5192_v29 = vpack.c.bf16 %v4261_v28, %v4260_v27  ;;  %v4293_v27 = vld [vmem:[%s7053_s11 + $0xa0] sm:$0xff]  ;;  %v4294_v28 = vld [vmem:[%s7053_s11 + $0xa8] sm:$0xff] }
 0x553   :  { %5141 = vmatprep.subr.bf16.mxu1 %v5140_v30  ;;  %v4262_v30 = vld [vmem:[%s7051_s9 + $0xe0] sm:$0xff] }
 0x554   :  { %v5195_v34 = vpack.c.bf16 %v4263_v32, %v4262_v30  ;;  %v4291_v30 = vld [vmem:[%s7054_s12 + $0x4] sm:$0x3]  ;;  %v5243_v32 = vpack.c.bf16 %v4294_v28, %v4293_v27 }
 0x556   :  { %5143 = vmatpush1.bf16.msra.mxu1 %v5142_v37  ;;  %v4264_v37 = vld [vmem:[%s7051_s9 + $0xf0] sm:$0xff] }
 0x557   :  { %2762 = vmatprep.subr.mxu1 %v4247_v38  ;;  %v4265_v38 = vld [vmem:[%s7051_s9 + $0xf8] sm:$0xff] }
 0x55a   :  { %2763 = vmatpush1.msra.mxu1 %v4246_v39  ;;  %v5198_v39 = vpack.c.bf16 %v4265_v38, %v4264_v37  ;;  %v4307_v37 = vld [vmem:[%s7053_s11 + $0xf8] sm:$0xff] }
 0x55b   :  { %4248 = vmatmul.mubr.msk.f32.vlgmr.msra.gmra.mrb[46].mxu1 %vm2042_vm8, %v6327_v63  ;;  %5227 = vmatprep.subr.bf16.mxu1 %v5380_v6  ;;  %v2969_v63 = vld [vmem:[%s7051_s9] sm:$0xff] }
 0x55c   :  { %2804 = vmatprep.mubr.f32.mxu1 %v5379_v53 }
 0x55f   :  { %4249 = vmatmul.mubr.msk.f32.gmra.mrb[48].mxu1 %vm2042_vm8, %v6319_v59  ;;  %v2970_v59 = vld [vmem:[%s7051_s9 + $0x8] sm:$0xff] }
 0x560   :  { %v5153_v47 = vpack.c.bf16 %v2970_v59, %v2969_v63  ;;  %v4271_v63 = vld [vmem:[%s7051_s9 + $0x128] sm:$0xff]  ;;  %4684 = vmatprep.mubr.msk.f32.mxu1 %vm5381_vm11, %v5379_v53 }
 0x62e   :  { %v2800_v40 = vpop.f32.mrb[46].mxu1 }
 0x62f   :  { %v2802_v41 = vpop.f32.mrb[47].mxu1 }
 0x632   :  { %v2806_v42 = vpop.f32.mrb[48].mxu1 }
 0x633   :  { %v5146_v43 = vpack.c.bf16 %v2806_v42, %v2800_v40  ;;  %v2808_v35 = vpop.f32.mrb[49].mxu1  ;;  %v4266_v40 = vld [vmem:[%s7051_s9 + $0x100] sm:$0xff] }
 0x634   :  { %v5144_v44 = vpack.c.bf16 %v2808_v35, %v2802_v41  ;;  %v4267_v41 = vld [vmem:[%s7051_s9 + $0x108] sm:$0xff]  ;;  %v4269_v35 = vld [vmem:[%s7051_s9 + $0x118] sm:$0xff] }
 0x635   :  { %v5201_v42 = vpack.c.bf16 %v4267_v41, %v4266_v40  ;;  %v4296_v40 = vld [vmem:[%s7053_s11 + $0xb8] sm:$0xff] }
 0x636   :  { %5145 = vmatprep.subr.bf16.mxu0 %v5144_v44 }
 0x637   :  { %5147 = vmatpush1.bf16.msra.mxu0 %v5146_v43 }
 0x638   :  { %5149 = vmatprep.subr.bf16.mxu0 %v5144_v44 }
 0x63a   :  { %4250 = vmatmul.mubr.msk.f32.vlgmr.msra.gmra.mrb[30].mxu0 %vm2816_vm9, %v2815_v45  ;;  %v4270_v45 = vld [vmem:[%s7051_s9 + $0x120] sm:$0xff] }
 0x63b   :  { %5151 = vmatpush1.bf16.msra.mxu0 %v5146_v43  ;;  %2960 = vmatprep.mubr.f32.mxu0 %v5379_v53  ;;  %v4268_v43 = vld [vmem:[%s7051_s9 + $0x110] sm:$0xff]  ;;  %v5207_v59 = vpack.c.bf16 %v4271_v63, %v4270_v45  ;;  %v4309_v45 = vld [vmem:[%s7053_s11 + $0x108] sm:$0xff]  ;;  %v4297_v63 = vld [vmem:[%s7053_s11 + $0xc0] sm:$0xff] }
 0x63c   :  { %5152 = vmatprep.subr.bf16.mxu0 %v5380_v6  ;;  %v5204_v44 = vpack.c.bf16 %v4269_v35, %v4268_v43 }
 0x63e   :  { %4252 = vmatmul.mubr.msk.f32.vlgmr.msra.gmra.mrb[32].mxu0 %vm2816_vm9, %v4251_v46  ;;  %v4272_v46 = vld [vmem:[%s7051_s9 + $0x130] sm:$0xff] }
 0x63f   :  { %5154 = vmatpush1.bf16.msra.mxu0 %v5153_v47  ;;  %v4273_v47 = vld [vmem:[%s7051_s9 + $0x138] sm:$0xff] }
 0x640   :  { %5155 = vmatprep.subr.bf16.mxu0 %v5380_v6  ;;  %v5210_v48 = vpack.c.bf16 %v4273_v47, %v4272_v46 }
 0x643   :  { %5157 = vmatpush1.bf16.msra.mxu0 %v5156_v51  ;;  %v3240_v51 = vld [vmem:[%s7053_s11 + $0x8] sm:$0xff] }
 0x644   :  { %5158 = vmatprep.subr.bf16.mxu0 %v5380_v6  ;;  %v5228_v54 = vpack.c.bf16 %v3240_v51, %v3239_v33  ;;  %v4311_v33 = vld [vmem:[%s7053_s11 + $0x118] sm:$0xff]  ;;  %v4299_v51 = vld [vmem:[%s7053_s11 + $0xd0] sm:$0xff] }
 0x646   :  { %5229 = vmatpush3.bf16.msra.mxu1 %v5228_v54 }
 0x647   :  { %5160 = vmatpush1.bf16.msra.mxu0 %v5159_v55  ;;  %v3242_v55 = vld [vmem:[%s7053_s11 + $0x18] sm:$0xff]  ;;  %5230 = vmatprep.subr.bf16.mxu1 %v5380_v6 }
 0x648   :  { %5161 = vmatprep.subr.bf16.mxu0 %v5380_v6  ;;  %v5231_v56 = vpack.c.bf16 %v3242_v55, %v3241_v52  ;;  %v4300_v52 = vld [vmem:[%s7053_s11 + $0xd8] sm:$0xff] }
 0x649   :  { %v5252_v55 = vpack.c.bf16 %v4300_v52, %v4299_v51 }
 0x64a   :  { %5232 = vmatpush3.bf16.msra.mxu1 %v5231_v56  ;;  %v4301_v56 = vld [vmem:[%s7053_s11 + $0xe0] sm:$0xff] }
 0x64b   :  { %5163 = vmatpush1.bf16.msra.mxu0 %v5162_v58  ;;  %v3244_v58 = vld [vmem:[%s7053_s11 + $0x28] sm:$0xff]  ;;  %5233 = vmatprep.subr.bf16.mxu1 %v5380_v6 }
 0x64c   :  { %5164 = vmatprep.subr.bf16.mxu0 %v5380_v6  ;;  %v5234_v60 = vpack.c.bf16 %v3244_v58, %v3243_v57  ;;  %v4302_v57 = vld [vmem:[%s7053_s11 + $0xe8] sm:$0xff]  ;;  %v4312_v58 = vld [vmem:[%s7053_s11 + $0x120] sm:$0xff] }
 0x64e   :  { %5235 = vmatpush3.bf16.msra.mxu1 %v5234_v60  ;;  %v5255_v60 = vpack.c.bf16 %v4302_v57, %v4301_v56 }
 0x64f   :  { %5166 = vmatpush1.bf16.msra.mxu0 %v5165_v62  ;;  %v3246_v62 = vld [vmem:[%s7053_s11 + $0x38] sm:$0xff]  ;;  %5236 = vmatprep.subr.bf16.mxu1 %v5380_v6 }
 0x650   :  { %5167 = vmatprep.subr.bf16.mxu0 %v5380_v6  ;;  %v5237_v0 = vpack.c.bf16 %v3246_v62, %v3245_v61  ;;  %v4313_v61 = vld [vmem:[%s7053_s11 + $0x128] sm:$0xff] }
 0x651   :  { %v5267_v62 = vpack.c.bf16 %v4313_v61, %v4312_v58 }
 0x652   :  { %5238 = vmatpush3.bf16.msra.mxu1 %v5237_v0  ;;  %v4314_v0 = vld [vmem:[%s7053_s11 + $0x130] sm:$0xff] }
 0x653   :  { %5169 = vmatpush1.bf16.msra.mxu0 %v5168_v2  ;;  %v3248_v2 = vld [vmem:[%s7053_s11 + $0x48] sm:$0xff]  ;;  %5239 = vmatprep.subr.bf16.mxu1 %v5380_v6 }
 0x654   :  { %5170 = vmatprep.subr.bf16.mxu0 %v5380_v6  ;;  %v5240_v3 = vpack.c.bf16 %v3248_v2, %v3247_v1  ;;  %v4315_v1 = vld [vmem:[%s7053_s11 + $0x138] sm:$0xff] }
 0x655   :  { %v5270_v2 = vpack.c.bf16 %v4315_v1, %v4314_v0 }
 0x656   :  { %5241 = vmatpush3.bf16.msra.mxu1 %v5240_v3  ;;  %v3811_v3 = vld [vmem:[%s7056_s14] sm:$0xff] }
 0x657   :  { %5172 = vmatpush1.bf16.msra.mxu0 %v5171_v5  ;;  %4687 = vmatprep.subr.mxu1 %v5379_v53 }
 0x658   :  { %5173 = vmatprep.subr.bf16.mxu0 %v5380_v6 }
 0x65b   :  { %5175 = vmatpush1.bf16.msra.mxu0 %v5174_v8 }
 0x65c   :  { %5176 = vmatprep.subr.bf16.mxu0 %v5380_v6 }
 0x65f   :  { %5178 = vmatpush1.bf16.msra.mxu0 %v5177_v11 }
 0x660   :  { %5179 = vmatprep.subr.bf16.mxu0 %v5380_v6 }
 0x663   :  { %5181 = vmatpush1.bf16.msra.mxu0 %v5180_v13  ;;  %v4280_v13 = vld [vmem:[%s7053_s11 + $0x58] sm:$0xff] }
 0x664   :  { %5182 = vmatprep.subr.bf16.mxu0 %v5380_v6 }
 0x70d   :  { %v2886_v14 = vpop.f32.mrb[30].mxu0 }
 0x70e   :  { %v2888_v15 = vpop.f32.mrb[31].mxu0 }
 0x711   :  { %v2962_v49 = vpop.f32.mrb[32].mxu0 }
 0x712   :  { %v2967_v18 = vmax.f32 %v2886_v14, %v2962_v49  ;;  %v2964_v19 = vpop.f32.mrb[33].mxu0  ;;  %v4277_v14 = vld [vmem:[%s7054_s12 + $0x2] sm:$0x3]  ;;  %v5216_v49 = vpack.c.bf16 %v4282_v17, %v4281_v16 }
 0x713   :  { %v2968_v20 = vmax.f32 %v2888_v15, %v2964_v19  ;;  %v5213_v15 = vpack.c.bf16 %v4280_v13, %v4279_v50  ;;  %v4284_v19 = vld [vmem:[%s7053_s11 + $0x78] sm:$0xff]  ;;  %v3815_v17 = vld [vmem:[%s7056_s14 + $0x20] sm:$0xff] }
 0x715   :  { %4253 = vmatprep.mubr.msk.f32.mxu0 %vm2989_vm10, %v2968_v20 }
 0x716   :  { %3058 = vmatmul.mubr.f32.vlgmr.msra.gmra.mrb[34].mxu0 %v2967_v18 }
 0x717   :  { %5184 = vmatpush1.bf16.msra.mxu0 %v5183_v21  ;;  %4274 = vmatprep.mubr.msk.f32.mxu0 %vm2989_vm10, %v2968_v20  ;;  %v4285_v21 = vld [vmem:[%s7053_s11 + $0x80] sm:$0xff] }
 0x718   :  { %5185 = vmatprep.subr.bf16.mxu0 %v5380_v6  ;;  %v5222_v23 = vpack.c.bf16 %v4286_v22, %v4285_v21 }
 0x71b   :  { %5187 = vmatpush1.bf16.msra.mxu0 %v5186_v24  ;;  %v4287_v24 = vld [vmem:[%s7053_s11 + $0x90] sm:$0xff] }
 0x71c   :  { %5188 = vmatprep.subr.bf16.mxu0 %v5380_v6  ;;  %v5225_v26 = vpack.c.bf16 %v4288_v25, %v4287_v24 }
 0x71f   :  { %5190 = vmatpush1.bf16.msra.mxu0 %v5189_v36 }
 0x720   :  { %5191 = vmatprep.subr.bf16.mxu0 %v5380_v6 }
 0x723   :  { %5193 = vmatpush1.bf16.msra.mxu0 %v5192_v29 }
 0x724   :  { %5194 = vmatprep.subr.bf16.mxu0 %v5380_v6 }
 0x727   :  { %5196 = vmatpush1.bf16.msra.mxu0 %v5195_v34  ;;  %v4306_v34 = vld [vmem:[%s7053_s11 + $0xf0] sm:$0xff] }
 0x728   :  { %5197 = vmatprep.subr.bf16.mxu0 %v5380_v6  ;;  %v5258_v43 = vpack.c.bf16 %v4307_v37, %v4306_v34 }
 0x72b   :  { %5199 = vmatpush1.bf16.msra.mxu0 %v5198_v39  ;;  %v4295_v39 = vld [vmem:[%s7053_s11 + $0xb0] sm:$0xff] }
 0x72c   :  { %5200 = vmatprep.subr.bf16.mxu0 %v5380_v6  ;;  %v5246_v35 = vpack.c.bf16 %v4296_v40, %v4295_v39 }
 0x72f   :  { %5202 = vmatpush1.bf16.msra.mxu0 %v5201_v42  ;;  %v4304_v42 = vld [vmem:[%s7054_s12 + $0x6] sm:$0x3] }
 0x730   :  { %5203 = vmatprep.subr.bf16.mxu0 %v5380_v6 }
 0x733   :  { %5205 = vmatpush1.bf16.msra.mxu0 %v5204_v44  ;;  %v4308_v44 = vld [vmem:[%s7053_s11 + $0x100] sm:$0xff] }
 0x734   :  { %5206 = vmatprep.subr.bf16.mxu0 %v5380_v6  ;;  %v5261_v46 = vpack.c.bf16 %v4309_v45, %v4308_v44 }
 0x737   :  { %5208 = vmatpush1.bf16.msra.mxu0 %v5207_v59  ;;  %v4298_v59 = vld [vmem:[%s7053_s11 + $0xc8] sm:$0xff] }
 0x738   :  { %5209 = vmatprep.subr.bf16.mxu0 %v5380_v6  ;;  %v5249_v47 = vpack.c.bf16 %v4298_v59, %v4297_v63 }
 0x73b   :  { %5211 = vmatpush1.bf16.msra.mxu0 %v5210_v48  ;;  %v4310_v48 = vld [vmem:[%s7053_s11 + $0x110] sm:$0xff] }
 0x73c   :  { %4631 = vmatprep.subr.mxu0 %v5379_v53  ;;  %v5264_v54 = vpack.c.bf16 %v4311_v33, %v4310_v48 }
 0x73e   :  { %3149 = vmatmul.mubr.f32.vlgmr.msra.gmra.mrb[36].mxu0 %v2967_v18  ;;  %v4283_v18 = vld [vmem:[%s7053_s11 + $0x70] sm:$0xff] }
 0x73f   :  { %4633 = vmatprep.mubr.msk.f32.mxu0 %vm5381_vm11, %v5379_v53  ;;  %v5219_v20 = vpack.c.bf16 %v4284_v19, %v4283_v18  ;;  %v3817_v19 = vld [vmem:[%s7056_s14 + $0x30] sm:$0x3] }
 0x7e9   :  { %v3059_v4 = vpop.f32.mrb[34].mxu0 }
 0x7ea   :  { %v3061_v5 = vpop.f32.mrb[35].mxu0 }
 0x811   :  { %v3150_v31 = vpop.f32.mrb[36].mxu0 }
 0x812   :  { %v3154_v8 = vmax.f32 %v3059_v4, %v3150_v31  ;;  %v3152_v9 = vpop.f32.mrb[37].mxu0  ;;  %v3812_v4 = vld [vmem:[%s7056_s14 + $0x8] sm:$0xff] }
 0x814   :  { %v3162_v10 = vadd.f32 %v4275_v7, %v3154_v8  ;;  %v5273_v7 = vpack.c.bf16 %v3812_v4, %v3811_v3 }
 0x816   :  { %v3163_v11 = vmax.f32 %v3162_v10, 0.0 }
 0x818   :  { %4632 = vmatpush3.msra.mxu0 %v3163_v11 }
 0x819   :  { %4634 = vmatmul.mubr.msk.f32.vlgmr.msra.gmra.mrb[38].mxu0 %vm3165_vm12, %v3164_v12  ;;  %4636 = vmatprep.subr.mxu0 %v5379_v53 }
 0x81a   :  { %4637 = vmatpush3.msra.mxu0 %v3163_v11  ;;  %4638 = vmatprep.mubr.msk.f32.mxu0 %vm5381_vm11, %v5379_v53 }
 0x81b   :  { %5212 = vmatprep.subr.bf16.mxu0 %v5380_v6 }
 0x81d   :  { %4639 = vmatmul.mubr.msk.f32.vlgmr.msra.gmra.mrb[40].mxu0 %vm3165_vm12, %v4277_v14  ;;  %v3813_v14 = vld [vmem:[%s7056_s14 + $0x10] sm:$0xff] }
 0x81e   :  { %5214 = vmatpush3.bf16.msra.mxu0 %v5213_v15  ;;  %4661 = vmatprep.mubr.msk.f32.mxu0 %vm5381_vm11, %v5379_v53  ;;  %v3814_v15 = vld [vmem:[%s7056_s14 + $0x18] sm:$0xff] }
 0x81f   :  { %5215 = vmatprep.subr.bf16.mxu0 %v5380_v6  ;;  %v5276_v16 = vpack.c.bf16 %v3814_v15, %v3813_v14 }
 0x822   :  { %5217 = vmatpush3.bf16.msra.mxu0 %v5216_v49  ;;  %v3816_v49 = vld [vmem:[%s7056_s14 + $0x28] sm:$0xff] }
 0x823   :  { %5218 = vmatprep.subr.bf16.mxu0 %v5380_v6  ;;  %v5279_v18 = vpack.c.bf16 %v3816_v49, %v3815_v17 }
 0x826   :  { %5220 = vmatpush3.bf16.msra.mxu0 %v5219_v20 }
 0x827   :  { %5221 = vmatprep.subr.bf16.mxu0 %v5380_v6 }
 0x82a   :  { %5223 = vmatpush3.bf16.msra.mxu0 %v5222_v23  ;;  %v4317_v23 = vld [vmem:[%s7055_s13] ss:$0 sm:$0xff]  ;;  %s5382_s13 = smov [#allocation2]  }
 0x82b   :  { %5224 = vmatprep.subr.bf16.mxu0 %v5380_v6  ;;  %s3922_s14 = sshll.u32 %s5382_s13, 4  ;;  %s3923_s14 = int_to_ptr.vmem [resolvable:$true] %s3922_s14 }
 0x82c   :  { %p5359_p1 = scmp.lt.s32.totalorder %s3923_s14, %s3923_s14 }
 0x82e   :  { %5226 = vmatpush3.bf16.msra.mxu0 %v5225_v26 }
 0x82f   :  { %5242 = vmatprep.subr.bf16.mxu0 %v5380_v6 }
 0x8ec   :  { %v3235_v36 = vpop.f32.mrb[38].mxu0 }
 0x8ed   :  { %4685 = vmatmul.mubr.msk.f32.vlgmr.msra.gmra.mrb[50].mxu1 %vm3335_vm13, %v3235_v36  ;;  %v4635_v29 = vpop.f32.mrb[39].mxu0 }
 0x8ee   :  { %4688 = vmatpush3.msra.mxu1 %v3163_v11  ;;  %4689 = vmatprep.mubr.msk.f32.mxu1 %vm5381_vm11, %v5379_v53 }
 0x8ef   :  { %4715 = vmatprep.subr.mxu1 %v5379_v53 }
 0x8f0   :  { %v3320_v38 = vpop.f32.mrb[40].mxu0 }
 0x8f1   :  { %4690 = vmatmul.mubr.msk.f32.vlgmr.msra.gmra.mrb[52].mxu1 %vm3165_vm12, %v4291_v30  ;;  %4662 = vmatmul.mubr.msk.f32.vlgmr.msra.gmra.mrb[42].mxu0 %vm3335_vm13, %v3320_v38  ;;  %v4640_v41 = vpop.f32.mrb[41].mxu0 }
 0x8f2   :  { %4716 = vmatpush3.msra.mxu1 %v3163_v11  ;;  %4717 = vmatprep.mubr.msk.f32.mxu1 %vm5381_vm11, %v5379_v53 }
 0x8f3   :  { %5244 = vmatpush3.bf16.msra.mxu0 %v5243_v32  ;;  %5257 = vmatprep.subr.bf16.mxu1 %v5380_v6 }
 0x8f4   :  { %5245 = vmatprep.subr.bf16.mxu0 %v5380_v6  ;;  %4712 = vmatprep.mubr.msk.f32.mxu0 %vm5381_vm11, %v5379_v53 }
 0x8f5   :  { %4718 = vmatmul.mubr.msk.f32.vlgmr.msra.gmra.mrb[54].mxu1 %vm3165_vm12, %v4304_v42 }
 0x8f6   :  { %5259 = vmatpush3.bf16.msra.mxu1 %v5258_v43  ;;  %4740 = vmatprep.mubr.msk.f32.mxu1 %vm5381_vm11, %v5379_v53 }
 0x8f7   :  { %5247 = vmatpush3.bf16.msra.mxu0 %v5246_v35  ;;  %5260 = vmatprep.subr.bf16.mxu1 %v5380_v6 }
 0x8f8   :  { %5248 = vmatprep.subr.bf16.mxu0 %v5380_v6 }
 0x8fa   :  { %5262 = vmatpush3.bf16.msra.mxu1 %v5261_v46 }
 0x8fb   :  { %5250 = vmatpush3.bf16.msra.mxu0 %v5249_v47  ;;  %5263 = vmatprep.subr.bf16.mxu1 %v5380_v6 }
 0x8fc   :  { %5251 = vmatprep.subr.bf16.mxu0 %v5380_v6 }
 0x8fe   :  { %5265 = vmatpush3.bf16.msra.mxu1 %v5264_v54 }
 0x8ff   :  { %5253 = vmatpush3.bf16.msra.mxu0 %v5252_v55  ;;  %5266 = vmatprep.subr.bf16.mxu1 %v5380_v6 }
 0x900   :  { %5254 = vmatprep.subr.bf16.mxu0 %v5380_v6 }
 0x902   :  { %5268 = vmatpush3.bf16.msra.mxu1 %v5267_v62 }
 0x903   :  { %5256 = vmatpush3.bf16.msra.mxu0 %v5255_v60  ;;  %5269 = vmatprep.subr.bf16.mxu1 %v5380_v6 }
 0x904   :  { %5272 = vmatprep.subr.bf16.mxu0 %v5380_v6 }
 0x906   :  { %5271 = vmatpush3.bf16.msra.mxu1 %v5270_v2 }
 0x9c0   :  { %v3478_v5 = vpop.f32.mrb[50].mxu1 }
 0x9c1   :  { %v4686_v31 = vpop.f32.mrb[51].mxu1 }
 0x9c4   :  { %v3553_v8 = vpop.f32.mrb[52].mxu1  ;;  %v3405_v9 = vpop.f32.mrb[42].mxu0 }
 0x9c5   :  { %4713 = vmatmul.mubr.msk.f32.vlgmr.msra.gmra.mrb[44].mxu0 %vm3335_vm13, %v3553_v8  ;;  %v3479_v10 = vadd.f32 %v3478_v5, %v3405_v9  ;;  %v4691_v11 = vpop.f32.mrb[53].mxu1  ;;  %v4663_v12 = vpop.f32.mrb[43].mxu0 }
 0x9c6   :  { %5274 = vmatpush3.bf16.msra.mxu0 %v5273_v7  ;;  %4757 = vmatprep.mubr.msk.f32.mxu0 %vm5381_vm11, %v5379_v53 }
 0x9c7   :  { %5275 = vmatprep.subr.bf16.mxu0 %v5380_v6 }
 0x9c8   :  { %v3713_v50 = vpop.f32.mrb[54].mxu1 }
 0x9c9   :  { %4741 = vmatmul.mubr.msk.f32.vlgmr.msra.gmra.mrb[56].mxu1 %vm3335_vm13, %v3713_v50  ;;  %v4719_v13 = vpop.f32.mrb[55].mxu1 }
 0x9ca   :  { %5277 = vmatpush3.bf16.msra.mxu0 %v5276_v16 }
 0x9cb   :  { %5278 = vmatprep.subr.bf16.mxu0 %v5380_v6 }
 0x9ce   :  { %5280 = vmatpush3.bf16.msra.mxu0 %v5279_v18 }
 0x9cf   :  { %4755 = vmatprep.subr.mxu0 %v5379_v53  ;;  %v4318_v53 = vld [vmem:[%s7057_s15] ss:$0 sm:$0xff]  ;;  %s5354_s15 = scalar_lea.vmem %s3923_s14, 32 }
 0x9d0   :  { %p5355_p0 = scmp.ne.s32.totalorder %s3923_s14, %s5354_s15  ;;  %p5360_p2 = scmp.lt.s32.totalorder %s5354_s15, %s5354_s15 }
 0x9d2   :  { %4756 = vmatpush3.msk.msra.mxu0 %vm3829_vm14, %v3817_v19  ;;  %p5361_p3 = por %p5360_p2, %p5359_p1 }
 0x9d4   :  { %p5362_p4 = pnand %p5361_p3, %p5355_p0 }
 0xa98   :  { %v3637_v20 = vpop.f32.mrb[44].mxu0 }
 0xa99   :  { %v3641_v6 = vadd.f32 %v3637_v20, %v3479_v10  ;;  %v4714_v21 = vpop.f32.mrb[45].mxu0 }
 0xa9c   :  { %v3797_v22 = vpop.f32.mrb[56].mxu1 }
 0xa9d   :  { %v3801_v24 = vadd.f32 %v3797_v22, %v3641_v6  ;;  %v4742_v25 = vpop.f32.mrb[57].mxu1 }
 0xa9f   :  { %v3809_v26 = vadd.f32 %v4317_v23, %v3801_v24 }
 0xaa1   :  { %v3810_v36 = vmax.f32 %v3809_v26, 0.0 }
 0xaa3   :  { %4758 = vmatmul.mubr.msk.f32.vlgmr.msra.gmra.mrb[46].mxu0 %vm3825_vm15, %v3810_v36 }
 0xb76   :  { %v3899_v27 = vpop.f32.mrb[46].mxu0 }
 0xb77   :  { %v3900_v28 = vadd.f32 %v4318_v53, %v3899_v27  ;;  %v4759_v29 = vpop.f32.mrb[47].mxu0 }
 0xb79   :  { %v3904_v30 = vsel %vm3903_vm0, %v3900_v28, -inf }
 0xb7a   :  { %3905 = vmax.xlane.f32.xlu0 %v3904_v30 }
 0xc07   :  { %v3906_v32 = vpop.xlane.xlu0 %3905 }
 0xc08   :  { %v3907_v34 = vsub.f32 %v3900_v28, %v3906_v32 }
 0xc0a   :  { %v3908_v37 = vmul.f32 1.442695, %v3907_v34 }
 0xc0c   :  { %5350 = vpow2.f32 %v3908_v37 }
 0xc16   :  { %v5351_v38 = vpop.eup %5350 }
 0xc17   :  { %v3910_v39 = vsel %vm3903_vm0, %v5351_v38, 0.0 }
 0xc18   :  { %3911 = vadd.xlane.f32.xlu0 %v3910_v39 }
 0xca5   :  { %v3912_v40 = vpop.xlane.xlu0 %3911 }
 0xca6   :  { %5352 = vrcp.f32 %v3912_v40 }
 0xcb0   :  { %v5353_v41 = vpop.eup %5352 }
 0xcb1   :  { %v3914_v42 = vmul.f32 %v5353_v41, %v5351_v38 }
 0xcb3   :  { %3915 = vst.msk [vmem:[#allocation2] sm:$0x3] %vm3903_vm0, %v3914_v42 }
 0xcb4   :  { %5365 = shalt.err (!%p5362_p4)
}
 0xcb5   :  { %s5366_s19 = scalar_lea.hbm %s7058_s16, 32 }
 0xcb6   :  { %p5367_p5 = scmp.ne.s32.totalorder %s7058_s16, %s5366_s19  ;;  %p5370_p6 = scmp.lt.u32.totalorder %s5366_s19, %s7058_s16 }
 0xcb8   :  { %p5372_p7 = pnand %p5370_p6, %p5367_p5 }
 0xcba   :  { %5375 = shalt.err (!%p5372_p7)
}
 0xcbb   :  { %3925 = dma.vmem_to_hbm [thread:$0]  %s3923_s14, 32, %s7058_s16, [#allocation3]  }
 0xcbc   :  { %5376 = dma.done.wait [#allocation3], 32  }
 0xcbd   :  { %5377 = vsyncadd [#allocation3], 4294967264 }
 0xcbe   :  { %3929 = vsyncpa [#allocation3], 1 }

</bundles_post_ra>
